<compile_context>
chip_gen: v6e
topology: v6e:2x2x1
jax: 0.10.0
libtpu: 0.0.40
codegen_flags: <defaults>
</compile_context>

<pallas_src>
import jax
import jax.numpy as jnp
from jax import lax
from jax.experimental import pallas as pl
from jax.experimental.pallas import tpu as pltpu


# ---------------------------------------------------------------------------
# Glue: ball query + grouping (QueryAndGroup), sample-major channels-first
# ---------------------------------------------------------------------------
def ball_query(points_xyz, new_xyz, radius, num_sample, min_radius=0.0):
    """points_xyz: (B, N, 3), new_xyz: (B, M, 3) -> idx (B, M, K) int32.

    Takes the first K in-ball indices (in point order); empty slots are filled
    with the first valid index (CUDA ball_query semantics).
    """
    n = points_xyz.shape[1]
    d2 = jnp.sum(
        (new_xyz[:, :, None, :] - points_xyz[:, None, :, :]) ** 2, axis=-1
    )  # (B, M, N)
    valid = d2 < radius ** 2
    if min_radius > 0.0:
        valid = valid & (d2 >= min_radius ** 2)
    # key = point index if valid else N; smallest K keys == first K valid idx
    key = jnp.where(valid, jnp.arange(n, dtype=jnp.int32), jnp.int32(n))
    neg_vals, _ = lax.top_k(-key, num_sample)        # descending(-key) == ascending(key)
    idx = -neg_vals                                  # (B, M, K)
    has = idx < n
    first = idx[..., :1]
    first = jnp.where(first < n, first, 0)           # no valid point -> index 0
    idx = jnp.where(has, idx, first)
    return idx.astype(jnp.int32)


def query_and_group_km(points_xyz, new_xyz, features, radius, num_sample,
                       use_xyz=True, normalize_xyz=False, min_radius=0.0):
    """Returns grouped tensor sample-major / channels-first: (B, K, C_in, M)."""
    idx = ball_query(points_xyz, new_xyz, radius, num_sample, min_radius)  # (B, M, K)
    idx_km = jnp.transpose(idx, (0, 2, 1))                                 # (B, K, M)

    def gather_bk(a_cf, ids_km):
        # a_cf: (B, C, N), ids_km: (B, K, M) -> (B, K, C, M)
        gat_k = jax.vmap(lambda a, i: a[:, i], in_axes=(None, 0))
        return jax.vmap(gat_k)(a_cf, ids_km)

    pieces = []
    if use_xyz:
        xyz_cf = jnp.transpose(points_xyz, (0, 2, 1))                      # (B, 3, N)
        g_xyz = gather_bk(xyz_cf, idx_km)                                  # (B, K, 3, M)
        centers = jnp.transpose(new_xyz, (0, 2, 1))[:, None]               # (B, 1, 3, M)
        g_xyz = g_xyz - centers
        if normalize_xyz:
            g_xyz = g_xyz / radius
        pieces.append(g_xyz)
    if features is not None:
        pieces.append(gather_bk(features, idx_km))                         # (B, K, C, M)
    return jnp.concatenate(pieces, axis=2)                                 # (B, K, C_in, M)


# ---------------------------------------------------------------------------
# Pallas kernel: shared MLP (1x1 convs + ReLU) -> attention (1x1 conv, sigmoid)
# -> gating -> running pool over K.  Everything lane-dense over the M tile.
# ---------------------------------------------------------------------------
def _make_scale_kernel(num_mlp_layers, pool_mod, num_sample, compute_dtype):
    def kernel(x_ref, *refs):
        out_ref = refs[-1]
        w_refs = refs[:-1]

        # Hoist weight loads/casts out of the per-sample loop.
        mlp_w = []
        for layer in range(num_mlp_layers):
            w = w_refs[2 * layer][...].astype(compute_dtype)      # (C_{l+1}, C_l)
            b = w_refs[2 * layer + 1][...]                        # (C_{l+1}, 1) f32
            mlp_w.append((w, b))
        wa = w_refs[2 * num_mlp_layers][...].astype(compute_dtype)
        ba = w_refs[2 * num_mlp_layers + 1][...]

        acc = None
        for kk in range(num_sample):
            h = x_ref[kk].astype(jnp.float32)                     # (C_in, TM) slab
            # shared MLP: 1x1 conv == (C_out, C_in) @ (C_in, TM), then ReLU
            for w, b in mlp_w:
                h = jnp.dot(w, h.astype(compute_dtype),
                            preferred_element_type=jnp.float32) + b
                h = jnp.maximum(h, 0.0)
            # attention MLP (single 1x1 conv) + sigmoid gate
            attn = jnp.dot(wa, h.astype(compute_dtype),
                           preferred_element_type=jnp.float32) + ba
            h = h * jax.nn.sigmoid(attn)                          # (C_out, TM)
            # running pool over the K samples (pure VPU, no relayout)
            if acc is None:
                acc = h
            elif pool_mod == "max":
                acc = jnp.maximum(acc, h)
            else:
                acc = acc + h
        if pool_mod == "avg":
            acc = acc * (1.0 / num_sample)
        out_ref[...] = acc.astype(out_ref.dtype)

    return kernel


def _const_index_map(ndim):
    return lambda *args, _n=ndim: (0,) * _n


def _choose_tm(m, k, c_max, c_in, c_out, vmem_budget_bytes=24 << 20):
    """Largest tile over M that (a) divides M, (b) is a multiple of 128 or == M,
    (c) keeps the f32 working set under a rough VMEM budget."""
    bytes_per_point = 4 * (2 * k * c_in + 2 * c_out + 4 * c_max)
    cap = max(1, vmem_budget_bytes // max(bytes_per_point, 1))
    target = min(m, 1024, cap)
    for d in range(target, 0, -1):
        if m % d == 0 and (d == m or d % 128 == 0):
            return d
    return m


def scale_forward_pallas(grouped_km, params, num_sample, pool_mod="max",
                         use_bf16_matmul=False, out_dtype=jnp.float32, tm=None):
    """grouped_km: (B, K, C_in, M) -> pooled (B, C_out, M)."""
    bsz, k, c_in, m = grouped_km.shape
    assert k == num_sample
    num_mlp_layers = len(params) - 1
    c_out = params[-1][0].shape[0]
    c_max = max(p[0].shape[0] for p in params)

    if tm is None:
        tm = _choose_tm(m, k, c_max, c_in, c_out)
    assert m % tm == 0

    flat_params = [t for wb in params for t in wb]

    in_specs = [pl.BlockSpec((None, k, c_in, tm), lambda b_, j: (b_, 0, 0, j))]
    for p in flat_params:
        in_specs.append(pl.BlockSpec(p.shape, _const_index_map(p.ndim)))
    out_spec = pl.BlockSpec((None, c_out, tm), lambda b_, j: (b_, 0, j))

    kernel = _make_scale_kernel(
        num_mlp_layers, pool_mod, k,
        jnp.bfloat16 if use_bf16_matmul else jnp.float32)

    # VMEM estimate: double-buffered input/output tiles + weights + live
    # per-sample intermediates (running pool keeps only O(C_max * TM) alive).
    weight_bytes = sum(int(p.size) * 4 for p in flat_params)
    in_bytes = int(jnp.dtype(grouped_km.dtype).itemsize)
    est = (2 * k * c_in * tm * in_bytes
           + 2 * c_out * tm * 4
           + 2 * weight_bytes
           + 4 * c_max * tm * 4)
    cp_kwargs = dict(dimension_semantics=("parallel", "parallel"))
    if est > (30 << 20):
        cp_kwargs["vmem_limit_bytes"] = min(int(est * 1.3), 64 << 20)

    return pl.pallas_call(
        kernel,
        out_shape=jax.ShapeDtypeStruct((bsz, c_out, m), out_dtype),
        grid=(bsz, m // tm),
        in_specs=in_specs,
        out_specs=out_spec,
        compiler_params=pltpu.CompilerParams(**cp_kwargs),
    )(grouped_km, *flat_params)


# ---------------------------------------------------------------------------
# Module-level forward (multi-scale)
# ---------------------------------------------------------------------------
def base_point_sa_module_attn_forward(points_xyz, features, new_xyz,
                                      all_params, radii, sample_nums,
                                      use_xyz=True, normalize_xyz=False,
                                      dilated_group=False, pool_mod="max",
                                      use_bf16_matmul=False,
                                      out_dtype=jnp.float32):
    """Mirrors BasePointSAModuleAttn.forward.

    Returns (new_xyz (B, M, 3), new_features (B, sum_k C_out_k, M)).
    """
    new_features_list = []
    for i, (radius, k_samp) in enumerate(zip(radii, sample_nums)):
        min_radius = radii[i - 1] if (dilated_group and i != 0) else 0.0
        grouped = query_and_group_km(points_xyz, new_xyz, features, radius,
                                     k_samp, use_xyz, normalize_xyz, min_radius)
        pooled = scale_forward_pallas(grouped, all_params[i], k_samp,
                                      pool_mod=pool_mod,
                                      use_bf16_matmul=use_bf16_matmul,
                                      out_dtype=out_dtype)      # (B, C_out, M)
        new_features_list.append(pooled)
    new_features = jnp.concatenate(new_features_list, axis=1)   # (B, sum C, M)
    return new_xyz, new_features


# ---------------------------------------------------------------------------
# Deterministic parameter init (Conv2d 1x1 weights stored as (C_out, C_in))
# ---------------------------------------------------------------------------
def init_scale_params(key, in_channels, mlp_channels_scale):
    params = []
    chans = [in_channels] + list(mlp_channels_scale)
    for l in range(len(chans) - 1):
        key, k1, k2 = jax.random.split(key, 3)
        w = jax.random.normal(k1, (chans[l + 1], chans[l]), jnp.float32) * 0.1
        bias = jax.random.normal(k2, (chans[l + 1], 1), jnp.float32) * 0.1
        params.append((w, bias))
    # attention MLP: C_out -> C_out 1x1 conv
    key, k1, k2 = jax.random.split(key, 3)
    wa = jax.random.normal(k1, (chans[-1], chans[-1]), jnp.float32) * 0.1
    ba = jax.random.normal(k2, (chans[-1], 1), jnp.float32) * 0.1
    params.append((wa, ba))
    return params, key


# ---------------------------------------------------------------------------
# Pure-JAX reference for correctness check (sample-major channels-first)
# ---------------------------------------------------------------------------
def _scale_ref(grouped_km, params, pool_mod):
    h = grouped_km.astype(jnp.float32)                     # (B, K, C_in, M)
    for w, b in params[:-1]:
        h = jnp.maximum(jnp.einsum("oc,bkcm->bkom", w, h) + b[None, None], 0.0)
    wa, ba = params[-1]
    h = h * jax.nn.sigmoid(jnp.einsum("oc,bkcm->bkom", wa, h) + ba[None, None])
    if pool_mod == "max":
        return jnp.max(h, axis=1)                          # (B, C_out, M)
    return jnp.mean(h, axis=1)


if __name__ == "__main__":
    # Config (small, consistent with the module): two scales
    B, N, C_feat = 2, 16, 4          # points, per-point feature channels
    M = 8                            # num_point (queries)
    radii = [0.4, 0.8]
    sample_nums = [8, 16]
    mlp_channels = [[16, 32], [16, 32]]
    use_xyz = True
    pool_mod = "max"

    key = jax.random.PRNGKey(0)
    key, k_pts, k_feat = jax.random.split(key, 3)
    points_xyz = jax.random.uniform(k_pts, (B, N, 3), jnp.float32)
    features = jax.random.normal(k_feat, (B, C_feat, N), jnp.float32)
    new_xyz = points_xyz[:, :M, :]   # stand-in for FPS-sampled centers

    in_channels = C_feat + (3 if use_xyz else 0)
    all_params = []
    for ch in mlp_channels:
        p, key = init_scale_params(key, in_channels, ch)
        all_params.append(p)

    out_xyz, out_feats = base_point_sa_module_attn_forward(
        points_xyz, features, new_xyz, all_params, radii, sample_nums,
        use_xyz=use_xyz, pool_mod=pool_mod)
    jax.block_until_ready(out_feats)

    # correctness check against a pure-JAX reference
    ref_list = []
    for i, (radius, k_samp) in enumerate(zip(radii, sample_nums)):
        grouped = query_and_group_km(points_xyz, new_xyz, features, radius,
                                     k_samp, use_xyz, False, 0.0)
        ref_list.append(_scale_ref(grouped, all_params[i], pool_mod))
    ref = jnp.concatenate(ref_list, axis=1)                 # (B, sum C, M)

    total_c = sum(ch[-1] for ch in mlp_channels)
    assert out_xyz.shape == (B, M, 3)
    assert out_feats.shape == (B, total_c, M)
    assert jnp.allclose(out_feats, ref, atol=1e-5, rtol=1e-5)

    print("KERNEL_OK")
</pallas_src>

<mosaic_0001>
module attributes {stable_mosaic.version = 11 : i64} {
  func.func @kernel(%arg0: i32, %arg1: i32, %arg2: memref<1x8x7x8xf32, #tpu.memory_space<vmem>>, %arg3: memref<16x7xf32, #tpu.memory_space<vmem>>, %arg4: memref<16x1xf32, #tpu.memory_space<vmem>>, %arg5: memref<32x16xf32, #tpu.memory_space<vmem>>, %arg6: memref<32x1xf32, #tpu.memory_space<vmem>>, %arg7: memref<32x32xf32, #tpu.memory_space<vmem>>, %arg8: memref<32x1xf32, #tpu.memory_space<vmem>>, %arg9: memref<1x32x8xf32, #tpu.memory_space<vmem>>) attributes {dimension_semantics = [#tpu.dimension_semantics<parallel>, #tpu.dimension_semantics<parallel>], iteration_bounds = array<i64: 2, 1>, scalar_prefetch = 0 : i64, scratch_operands = 0 : i64, tpu.core_type = #tpu.core_type<tc>, window_params = [{transform_indices = @transform_0, window_bounds = array<i64: 1, 8, 7, 8>}, {pipeline_mode = #tpu.pipeline_mode<synchronous>, transform_indices = @transform_1, window_bounds = array<i64: 16, 7>}, {pipeline_mode = #tpu.pipeline_mode<synchronous>, transform_indices = @transform_2, window_bounds = array<i64: 16, 1>}, {pipeline_mode = #tpu.pipeline_mode<synchronous>, transform_indices = @transform_3, window_bounds = array<i64: 32, 16>}, {pipeline_mode = #tpu.pipeline_mode<synchronous>, transform_indices = @transform_4, window_bounds = array<i64: 32, 1>}, {pipeline_mode = #tpu.pipeline_mode<synchronous>, transform_indices = @transform_5, window_bounds = array<i64: 32, 32>}, {pipeline_mode = #tpu.pipeline_mode<synchronous>, transform_indices = @transform_6, window_bounds = array<i64: 32, 1>}, {transform_indices = @transform_7, window_bounds = array<i64: 1, 32, 8>}]} {
    %c0 = arith.constant 0 : index
    %c0_0 = arith.constant 0 : index
    %0 = vector.load %arg3[%c0, %c0_0] : memref<16x7xf32, #tpu.memory_space<vmem>>, vector<16x7xf32>
    %c0_1 = arith.constant 0 : index
    %c0_2 = arith.constant 0 : index
    %1 = vector.load %arg4[%c0_1, %c0_2] : memref<16x1xf32, #tpu.memory_space<vmem>>, vector<16x1xf32>
    %c0_3 = arith.constant 0 : index
    %c0_4 = arith.constant 0 : index
    %2 = vector.load %arg5[%c0_3, %c0_4] : memref<32x16xf32, #tpu.memory_space<vmem>>, vector<32x16xf32>
    %c0_5 = arith.constant 0 : index
    %c0_6 = arith.constant 0 : index
    %3 = vector.load %arg6[%c0_5, %c0_6] : memref<32x1xf32, #tpu.memory_space<vmem>>, vector<32x1xf32>
    %c0_7 = arith.constant 0 : index
    %c0_8 = arith.constant 0 : index
    %4 = vector.load %arg7[%c0_7, %c0_8] : memref<32x32xf32, #tpu.memory_space<vmem>>, vector<32x32xf32>
    %c0_9 = arith.constant 0 : index
    %c0_10 = arith.constant 0 : index
    %5 = vector.load %arg8[%c0_9, %c0_10] : memref<32x1xf32, #tpu.memory_space<vmem>>, vector<32x1xf32>
    %c0_11 = arith.constant 0 : index
    %c0_12 = arith.constant 0 : index
    %c0_13 = arith.constant 0 : index
    %c0_14 = arith.constant 0 : index
    %6 = vector.load %arg2[%c0_11, %c0_12, %c0_13, %c0_14] : memref<1x8x7x8xf32, #tpu.memory_space<vmem>>, vector<1x1x7x8xf32>
    %7 = vector.shape_cast %6 : vector<1x1x7x8xf32> to vector<7x8xf32>
    %cst = arith.constant dense<0.000000e+00> : vector<16x8xf32>
    %8 = tpu.matmul %0, %7, %cst {dimension_numbers = #tpu.dot_dimension_numbers<[1], [0], [0], [1], [0, 0, 1, 1], [], []>} : vector<16x7xf32>, vector<7x8xf32>, vector<16x8xf32> -> vector<16x8xf32>
    %9 = vector.broadcast %1 : vector<16x1xf32> to vector<16x8xf32>
    %10 = arith.addf %8, %9 : vector<16x8xf32>
    %cst_15 = arith.constant 0.000000e+00 : f32
    %11 = vector.broadcast %cst_15 : f32 to vector<16x8xf32>
    %12 = arith.maximumf %10, %11 : vector<16x8xf32>
    %cst_16 = arith.constant dense<0.000000e+00> : vector<32x8xf32>
    %13 = tpu.matmul %2, %12, %cst_16 {dimension_numbers = #tpu.dot_dimension_numbers<[1], [0], [0], [1], [0, 0, 1, 1], [], []>} : vector<32x16xf32>, vector<16x8xf32>, vector<32x8xf32> -> vector<32x8xf32>
    %14 = vector.broadcast %3 : vector<32x1xf32> to vector<32x8xf32>
    %15 = arith.addf %13, %14 : vector<32x8xf32>
    %cst_17 = arith.constant 0.000000e+00 : f32
    %16 = vector.broadcast %cst_17 : f32 to vector<32x8xf32>
    %17 = arith.maximumf %15, %16 : vector<32x8xf32>
    %cst_18 = arith.constant dense<0.000000e+00> : vector<32x8xf32>
    %18 = tpu.matmul %4, %17, %cst_18 {dimension_numbers = #tpu.dot_dimension_numbers<[1], [0], [0], [1], [0, 0, 1, 1], [], []>} : vector<32x32xf32>, vector<32x8xf32>, vector<32x8xf32> -> vector<32x8xf32>
    %19 = vector.broadcast %5 : vector<32x1xf32> to vector<32x8xf32>
    %20 = arith.addf %18, %19 : vector<32x8xf32>
    %21 = arith.negf %20 : vector<32x8xf32>
    %22 = math.exp %21 : vector<32x8xf32>
    %cst_19 = arith.constant 1.000000e+00 : f32
    %23 = vector.broadcast %cst_19 : f32 to vector<32x8xf32>
    %24 = arith.addf %23, %22 : vector<32x8xf32>
    %25 = arith.divf %23, %24 : vector<32x8xf32>
    %26 = arith.mulf %17, %25 : vector<32x8xf32>
    %c0_20 = arith.constant 0 : index
    %c1 = arith.constant 1 : index
    %c0_21 = arith.constant 0 : index
    %c0_22 = arith.constant 0 : index
    %27 = vector.load %arg2[%c0_20, %c1, %c0_21, %c0_22] : memref<1x8x7x8xf32, #tpu.memory_space<vmem>>, vector<1x1x7x8xf32>
    %28 = vector.shape_cast %27 : vector<1x1x7x8xf32> to vector<7x8xf32>
    %cst_23 = arith.constant dense<0.000000e+00> : vector<16x8xf32>
    %29 = tpu.matmul %0, %28, %cst_23 {dimension_numbers = #tpu.dot_dimension_numbers<[1], [0], [0], [1], [0, 0, 1, 1], [], []>} : vector<16x7xf32>, vector<7x8xf32>, vector<16x8xf32> -> vector<16x8xf32>
    %30 = vector.broadcast %1 : vector<16x1xf32> to vector<16x8xf32>
    %31 = arith.addf %29, %30 : vector<16x8xf32>
    %cst_24 = arith.constant 0.000000e+00 : f32
    %32 = vector.broadcast %cst_24 : f32 to vector<16x8xf32>
    %33 = arith.maximumf %31, %32 : vector<16x8xf32>
    %cst_25 = arith.constant dense<0.000000e+00> : vector<32x8xf32>
    %34 = tpu.matmul %2, %33, %cst_25 {dimension_numbers = #tpu.dot_dimension_numbers<[1], [0], [0], [1], [0, 0, 1, 1], [], []>} : vector<32x16xf32>, vector<16x8xf32>, vector<32x8xf32> -> vector<32x8xf32>
    %35 = vector.broadcast %3 : vector<32x1xf32> to vector<32x8xf32>
    %36 = arith.addf %34, %35 : vector<32x8xf32>
    %cst_26 = arith.constant 0.000000e+00 : f32
    %37 = vector.broadcast %cst_26 : f32 to vector<32x8xf32>
    %38 = arith.maximumf %36, %37 : vector<32x8xf32>
    %cst_27 = arith.constant dense<0.000000e+00> : vector<32x8xf32>
    %39 = tpu.matmul %4, %38, %cst_27 {dimension_numbers = #tpu.dot_dimension_numbers<[1], [0], [0], [1], [0, 0, 1, 1], [], []>} : vector<32x32xf32>, vector<32x8xf32>, vector<32x8xf32> -> vector<32x8xf32>
    %40 = vector.broadcast %5 : vector<32x1xf32> to vector<32x8xf32>
    %41 = arith.addf %39, %40 : vector<32x8xf32>
    %42 = arith.negf %41 : vector<32x8xf32>
    %43 = math.exp %42 : vector<32x8xf32>
    %cst_28 = arith.constant 1.000000e+00 : f32
    %44 = vector.broadcast %cst_28 : f32 to vector<32x8xf32>
    %45 = arith.addf %44, %43 : vector<32x8xf32>
    %46 = arith.divf %44, %45 : vector<32x8xf32>
    %47 = arith.mulf %38, %46 : vector<32x8xf32>
    %48 = arith.maximumf %26, %47 : vector<32x8xf32>
    %c0_29 = arith.constant 0 : index
    %c2 = arith.constant 2 : index
    %c0_30 = arith.constant 0 : index
    %c0_31 = arith.constant 0 : index
    %49 = vector.load %arg2[%c0_29, %c2, %c0_30, %c0_31] : memref<1x8x7x8xf32, #tpu.memory_space<vmem>>, vector<1x1x7x8xf32>
    %50 = vector.shape_cast %49 : vector<1x1x7x8xf32> to vector<7x8xf32>
    %cst_32 = arith.constant dense<0.000000e+00> : vector<16x8xf32>
    %51 = tpu.matmul %0, %50, %cst_32 {dimension_numbers = #tpu.dot_dimension_numbers<[1], [0], [0], [1], [0, 0, 1, 1], [], []>} : vector<16x7xf32>, vector<7x8xf32>, vector<16x8xf32> -> vector<16x8xf32>
    %52 = vector.broadcast %1 : vector<16x1xf32> to vector<16x8xf32>
    %53 = arith.addf %51, %52 : vector<16x8xf32>
    %cst_33 = arith.constant 0.000000e+00 : f32
    %54 = vector.broadcast %cst_33 : f32 to vector<16x8xf32>
    %55 = arith.maximumf %53, %54 : vector<16x8xf32>
    %cst_34 = arith.constant dense<0.000000e+00> : vector<32x8xf32>
    %56 = tpu.matmul %2, %55, %cst_34 {dimension_numbers = #tpu.dot_dimension_numbers<[1], [0], [0], [1], [0, 0, 1, 1], [], []>} : vector<32x16xf32>, vector<16x8xf32>, vector<32x8xf32> -> vector<32x8xf32>
    %57 = vector.broadcast %3 : vector<32x1xf32> to vector<32x8xf32>
    %58 = arith.addf %56, %57 : vector<32x8xf32>
    %cst_35 = arith.constant 0.000000e+00 : f32
    %59 = vector.broadcast %cst_35 : f32 to vector<32x8xf32>
    %60 = arith.maximumf %58, %59 : vector<32x8xf32>
    %cst_36 = arith.constant dense<0.000000e+00> : vector<32x8xf32>
    %61 = tpu.matmul %4, %60, %cst_36 {dimension_numbers = #tpu.dot_dimension_numbers<[1], [0], [0], [1], [0, 0, 1, 1], [], []>} : vector<32x32xf32>, vector<32x8xf32>, vector<32x8xf32> -> vector<32x8xf32>
    %62 = vector.broadcast %5 : vector<32x1xf32> to vector<32x8xf32>
    %63 = arith.addf %61, %62 : vector<32x8xf32>
    %64 = arith.negf %63 : vector<32x8xf32>
    %65 = math.exp %64 : vector<32x8xf32>
    %cst_37 = arith.constant 1.000000e+00 : f32
    %66 = vector.broadcast %cst_37 : f32 to vector<32x8xf32>
    %67 = arith.addf %66, %65 : vector<32x8xf32>
    %68 = arith.divf %66, %67 : vector<32x8xf32>
    %69 = arith.mulf %60, %68 : vector<32x8xf32>
    %70 = arith.maximumf %48, %69 : vector<32x8xf32>
    %c0_38 = arith.constant 0 : index
    %c3 = arith.constant 3 : index
    %c0_39 = arith.constant 0 : index
    %c0_40 = arith.constant 0 : index
    %71 = vector.load %arg2[%c0_38, %c3, %c0_39, %c0_40] : memref<1x8x7x8xf32, #tpu.memory_space<vmem>>, vector<1x1x7x8xf32>
    %72 = vector.shape_cast %71 : vector<1x1x7x8xf32> to vector<7x8xf32>
    %cst_41 = arith.constant dense<0.000000e+00> : vector<16x8xf32>
    %73 = tpu.matmul %0, %72, %cst_41 {dimension_numbers = #tpu.dot_dimension_numbers<[1], [0], [0], [1], [0, 0, 1, 1], [], []>} : vector<16x7xf32>, vector<7x8xf32>, vector<16x8xf32> -> vector<16x8xf32>
    %74 = vector.broadcast %1 : vector<16x1xf32> to vector<16x8xf32>
    %75 = arith.addf %73, %74 : vector<16x8xf32>
    %cst_42 = arith.constant 0.000000e+00 : f32
    %76 = vector.broadcast %cst_42 : f32 to vector<16x8xf32>
    %77 = arith.maximumf %75, %76 : vector<16x8xf32>
    %cst_43 = arith.constant dense<0.000000e+00> : vector<32x8xf32>
    %78 = tpu.matmul %2, %77, %cst_43 {dimension_numbers = #tpu.dot_dimension_numbers<[1], [0], [0], [1], [0, 0, 1, 1], [], []>} : vector<32x16xf32>, vector<16x8xf32>, vector<32x8xf32> -> vector<32x8xf32>
    %79 = vector.broadcast %3 : vector<32x1xf32> to vector<32x8xf32>
    %80 = arith.addf %78, %79 : vector<32x8xf32>
    %cst_44 = arith.constant 0.000000e+00 : f32
    %81 = vector.broadcast %cst_44 : f32 to vector<32x8xf32>
    %82 = arith.maximumf %80, %81 : vector<32x8xf32>
    %cst_45 = arith.constant dense<0.000000e+00> : vector<32x8xf32>
    %83 = tpu.matmul %4, %82, %cst_45 {dimension_numbers = #tpu.dot_dimension_numbers<[1], [0], [0], [1], [0, 0, 1, 1], [], []>} : vector<32x32xf32>, vector<32x8xf32>, vector<32x8xf32> -> vector<32x8xf32>
    %84 = vector.broadcast %5 : vector<32x1xf32> to vector<32x8xf32>
    %85 = arith.addf %83, %84 : vector<32x8xf32>
    %86 = arith.negf %85 : vector<32x8xf32>
    %87 = math.exp %86 : vector<32x8xf32>
    %cst_46 = arith.constant 1.000000e+00 : f32
    %88 = vector.broadcast %cst_46 : f32 to vector<32x8xf32>
    %89 = arith.addf %88, %87 : vector<32x8xf32>
    %90 = arith.divf %88, %89 : vector<32x8xf32>
    %91 = arith.mulf %82, %90 : vector<32x8xf32>
    %92 = arith.maximumf %70, %91 : vector<32x8xf32>
    %c0_47 = arith.constant 0 : index
    %c4 = arith.constant 4 : index
    %c0_48 = arith.constant 0 : index
    %c0_49 = arith.constant 0 : index
    %93 = vector.load %arg2[%c0_47, %c4, %c0_48, %c0_49] : memref<1x8x7x8xf32, #tpu.memory_space<vmem>>, vector<1x1x7x8xf32>
    %94 = vector.shape_cast %93 : vector<1x1x7x8xf32> to vector<7x8xf32>
    %cst_50 = arith.constant dense<0.000000e+00> : vector<16x8xf32>
    %95 = tpu.matmul %0, %94, %cst_50 {dimension_numbers = #tpu.dot_dimension_numbers<[1], [0], [0], [1], [0, 0, 1, 1], [], []>} : vector<16x7xf32>, vector<7x8xf32>, vector<16x8xf32> -> vector<16x8xf32>
    %96 = vector.broadcast %1 : vector<16x1xf32> to vector<16x8xf32>
    %97 = arith.addf %95, %96 : vector<16x8xf32>
    %cst_51 = arith.constant 0.000000e+00 : f32
    %98 = vector.broadcast %cst_51 : f32 to vector<16x8xf32>
    %99 = arith.maximumf %97, %98 : vector<16x8xf32>
    %cst_52 = arith.constant dense<0.000000e+00> : vector<32x8xf32>
    %100 = tpu.matmul %2, %99, %cst_52 {dimension_numbers = #tpu.dot_dimension_numbers<[1], [0], [0], [1], [0, 0, 1, 1], [], []>} : vector<32x16xf32>, vector<16x8xf32>, vector<32x8xf32> -> vector<32x8xf32>
    %101 = vector.broadcast %3 : vector<32x1xf32> to vector<32x8xf32>
    %102 = arith.addf %100, %101 : vector<32x8xf32>
    %cst_53 = arith.constant 0.000000e+00 : f32
    %103 = vector.broadcast %cst_53 : f32 to vector<32x8xf32>
    %104 = arith.maximumf %102, %103 : vector<32x8xf32>
    %cst_54 = arith.constant dense<0.000000e+00> : vector<32x8xf32>
    %105 = tpu.matmul %4, %104, %cst_54 {dimension_numbers = #tpu.dot_dimension_numbers<[1], [0], [0], [1], [0, 0, 1, 1], [], []>} : vector<32x32xf32>, vector<32x8xf32>, vector<32x8xf32> -> vector<32x8xf32>
    %106 = vector.broadcast %5 : vector<32x1xf32> to vector<32x8xf32>
    %107 = arith.addf %105, %106 : vector<32x8xf32>
    %108 = arith.negf %107 : vector<32x8xf32>
    %109 = math.exp %108 : vector<32x8xf32>
    %cst_55 = arith.constant 1.000000e+00 : f32
    %110 = vector.broadcast %cst_55 : f32 to vector<32x8xf32>
    %111 = arith.addf %110, %109 : vector<32x8xf32>
    %112 = arith.divf %110, %111 : vector<32x8xf32>
    %113 = arith.mulf %104, %112 : vector<32x8xf32>
    %114 = arith.maximumf %92, %113 : vector<32x8xf32>
    %c0_56 = arith.constant 0 : index
    %c5 = arith.constant 5 : index
    %c0_57 = arith.constant 0 : index
    %c0_58 = arith.constant 0 : index
    %115 = vector.load %arg2[%c0_56, %c5, %c0_57, %c0_58] : memref<1x8x7x8xf32, #tpu.memory_space<vmem>>, vector<1x1x7x8xf32>
    %116 = vector.shape_cast %115 : vector<1x1x7x8xf32> to vector<7x8xf32>
    %cst_59 = arith.constant dense<0.000000e+00> : vector<16x8xf32>
    %117 = tpu.matmul %0, %116, %cst_59 {dimension_numbers = #tpu.dot_dimension_numbers<[1], [0], [0], [1], [0, 0, 1, 1], [], []>} : vector<16x7xf32>, vector<7x8xf32>, vector<16x8xf32> -> vector<16x8xf32>
    %118 = vector.broadcast %1 : vector<16x1xf32> to vector<16x8xf32>
    %119 = arith.addf %117, %118 : vector<16x8xf32>
    %cst_60 = arith.constant 0.000000e+00 : f32
    %120 = vector.broadcast %cst_60 : f32 to vector<16x8xf32>
    %121 = arith.maximumf %119, %120 : vector<16x8xf32>
    %cst_61 = arith.constant dense<0.000000e+00> : vector<32x8xf32>
    %122 = tpu.matmul %2, %121, %cst_61 {dimension_numbers = #tpu.dot_dimension_numbers<[1], [0], [0], [1], [0, 0, 1, 1], [], []>} : vector<32x16xf32>, vector<16x8xf32>, vector<32x8xf32> -> vector<32x8xf32>
    %123 = vector.broadcast %3 : vector<32x1xf32> to vector<32x8xf32>
    %124 = arith.addf %122, %123 : vector<32x8xf32>
    %cst_62 = arith.constant 0.000000e+00 : f32
    %125 = vector.broadcast %cst_62 : f32 to vector<32x8xf32>
    %126 = arith.maximumf %124, %125 : vector<32x8xf32>
    %cst_63 = arith.constant dense<0.000000e+00> : vector<32x8xf32>
    %127 = tpu.matmul %4, %126, %cst_63 {dimension_numbers = #tpu.dot_dimension_numbers<[1], [0], [0], [1], [0, 0, 1, 1], [], []>} : vector<32x32xf32>, vector<32x8xf32>, vector<32x8xf32> -> vector<32x8xf32>
    %128 = vector.broadcast %5 : vector<32x1xf32> to vector<32x8xf32>
    %129 = arith.addf %127, %128 : vector<32x8xf32>
    %130 = arith.negf %129 : vector<32x8xf32>
    %131 = math.exp %130 : vector<32x8xf32>
    %cst_64 = arith.constant 1.000000e+00 : f32
    %132 = vector.broadcast %cst_64 : f32 to vector<32x8xf32>
    %133 = arith.addf %132, %131 : vector<32x8xf32>
    %134 = arith.divf %132, %133 : vector<32x8xf32>
    %135 = arith.mulf %126, %134 : vector<32x8xf32>
    %136 = arith.maximumf %114, %135 : vector<32x8xf32>
    %c0_65 = arith.constant 0 : index
    %c6 = arith.constant 6 : index
    %c0_66 = arith.constant 0 : index
    %c0_67 = arith.constant 0 : index
    %137 = vector.load %arg2[%c0_65, %c6, %c0_66, %c0_67] : memref<1x8x7x8xf32, #tpu.memory_space<vmem>>, vector<1x1x7x8xf32>
    %138 = vector.shape_cast %137 : vector<1x1x7x8xf32> to vector<7x8xf32>
    %cst_68 = arith.constant dense<0.000000e+00> : vector<16x8xf32>
    %139 = tpu.matmul %0, %138, %cst_68 {dimension_numbers = #tpu.dot_dimension_numbers<[1], [0], [0], [1], [0, 0, 1, 1], [], []>} : vector<16x7xf32>, vector<7x8xf32>, vector<16x8xf32> -> vector<16x8xf32>
    %140 = vector.broadcast %1 : vector<16x1xf32> to vector<16x8xf32>
    %141 = arith.addf %139, %140 : vector<16x8xf32>
    %cst_69 = arith.constant 0.000000e+00 : f32
    %142 = vector.broadcast %cst_69 : f32 to vector<16x8xf32>
    %143 = arith.maximumf %141, %142 : vector<16x8xf32>
    %cst_70 = arith.constant dense<0.000000e+00> : vector<32x8xf32>
    %144 = tpu.matmul %2, %143, %cst_70 {dimension_numbers = #tpu.dot_dimension_numbers<[1], [0], [0], [1], [0, 0, 1, 1], [], []>} : vector<32x16xf32>, vector<16x8xf32>, vector<32x8xf32> -> vector<32x8xf32>
    %145 = vector.broadcast %3 : vector<32x1xf32> to vector<32x8xf32>
    %146 = arith.addf %144, %145 : vector<32x8xf32>
    %cst_71 = arith.constant 0.000000e+00 : f32
    %147 = vector.broadcast %cst_71 : f32 to vector<32x8xf32>
    %148 = arith.maximumf %146, %147 : vector<32x8xf32>
    %cst_72 = arith.constant dense<0.000000e+00> : vector<32x8xf32>
    %149 = tpu.matmul %4, %148, %cst_72 {dimension_numbers = #tpu.dot_dimension_numbers<[1], [0], [0], [1], [0, 0, 1, 1], [], []>} : vector<32x32xf32>, vector<32x8xf32>, vector<32x8xf32> -> vector<32x8xf32>
    %150 = vector.broadcast %5 : vector<32x1xf32> to vector<32x8xf32>
    %151 = arith.addf %149, %150 : vector<32x8xf32>
    %152 = arith.negf %151 : vector<32x8xf32>
    %153 = math.exp %152 : vector<32x8xf32>
    %cst_73 = arith.constant 1.000000e+00 : f32
    %154 = vector.broadcast %cst_73 : f32 to vector<32x8xf32>
    %155 = arith.addf %154, %153 : vector<32x8xf32>
    %156 = arith.divf %154, %155 : vector<32x8xf32>
    %157 = arith.mulf %148, %156 : vector<32x8xf32>
    %158 = arith.maximumf %136, %157 : vector<32x8xf32>
    %c0_74 = arith.constant 0 : index
    %c7 = arith.constant 7 : index
    %c0_75 = arith.constant 0 : index
    %c0_76 = arith.constant 0 : index
    %159 = vector.load %arg2[%c0_74, %c7, %c0_75, %c0_76] : memref<1x8x7x8xf32, #tpu.memory_space<vmem>>, vector<1x1x7x8xf32>
    %160 = vector.shape_cast %159 : vector<1x1x7x8xf32> to vector<7x8xf32>
    %cst_77 = arith.constant dense<0.000000e+00> : vector<16x8xf32>
    %161 = tpu.matmul %0, %160, %cst_77 {dimension_numbers = #tpu.dot_dimension_numbers<[1], [0], [0], [1], [0, 0, 1, 1], [], []>} : vector<16x7xf32>, vector<7x8xf32>, vector<16x8xf32> -> vector<16x8xf32>
    %162 = vector.broadcast %1 : vector<16x1xf32> to vector<16x8xf32>
    %163 = arith.addf %161, %162 : vector<16x8xf32>
    %cst_78 = arith.constant 0.000000e+00 : f32
    %164 = vector.broadcast %cst_78 : f32 to vector<16x8xf32>
    %165 = arith.maximumf %163, %164 : vector<16x8xf32>
    %cst_79 = arith.constant dense<0.000000e+00> : vector<32x8xf32>
    %166 = tpu.matmul %2, %165, %cst_79 {dimension_numbers = #tpu.dot_dimension_numbers<[1], [0], [0], [1], [0, 0, 1, 1], [], []>} : vector<32x16xf32>, vector<16x8xf32>, vector<32x8xf32> -> vector<32x8xf32>
    %167 = vector.broadcast %3 : vector<32x1xf32> to vector<32x8xf32>
    %168 = arith.addf %166, %167 : vector<32x8xf32>
    %cst_80 = arith.constant 0.000000e+00 : f32
    %169 = vector.broadcast %cst_80 : f32 to vector<32x8xf32>
    %170 = arith.maximumf %168, %169 : vector<32x8xf32>
    %cst_81 = arith.constant dense<0.000000e+00> : vector<32x8xf32>
    %171 = tpu.matmul %4, %170, %cst_81 {dimension_numbers = #tpu.dot_dimension_numbers<[1], [0], [0], [1], [0, 0, 1, 1], [], []>} : vector<32x32xf32>, vector<32x8xf32>, vector<32x8xf32> -> vector<32x8xf32>
    %172 = vector.broadcast %5 : vector<32x1xf32> to vector<32x8xf32>
    %173 = arith.addf %171, %172 : vector<32x8xf32>
    %174 = arith.negf %173 : vector<32x8xf32>
    %175 = math.exp %174 : vector<32x8xf32>
    %cst_82 = arith.constant 1.000000e+00 : f32
    %176 = vector.broadcast %cst_82 : f32 to vector<32x8xf32>
    %177 = arith.addf %176, %175 : vector<32x8xf32>
    %178 = arith.divf %176, %177 : vector<32x8xf32>
    %179 = arith.mulf %170, %178 : vector<32x8xf32>
    %180 = arith.maximumf %158, %179 : vector<32x8xf32>
    %c0_83 = arith.constant 0 : index
    %c0_84 = arith.constant 0 : index
    %c0_85 = arith.constant 0 : index
    %181 = vector.load %arg9[%c0_83, %c0_84, %c0_85] : memref<1x32x8xf32, #tpu.memory_space<vmem>>, vector<1x32x8xf32>
    %182 = vector.shape_cast %181 : vector<1x32x8xf32> to vector<32x8xf32>
    %183 = vector.shape_cast %180 : vector<32x8xf32> to vector<1x32x8xf32>
    tpu.vector_store %arg9[%c0_83, %c0_84, %c0_85], %183 {strides = array<i32>} : memref<1x32x8xf32, #tpu.memory_space<vmem>>, vector<1x32x8xf32>,
    return
  }
  func.func @transform_0(%arg0: i32, %arg1: i32) -> (i32, i32, i32, i32) {
    %c0_i32 = arith.constant 0 : i32
    %c0_i32_0 = arith.constant 0 : i32
    %c0_i32_1 = arith.constant 0 : i32
    return %arg0, %c0_i32, %c0_i32_0, %arg1 : i32, i32, i32, i32
  }
  func.func @transform_1(%arg0: i32, %arg1: i32) -> (i32, i32) {
    %c0_i32 = arith.constant 0 : i32
    %c0_i32_0 = arith.constant 0 : i32
    %c0_i32_1 = arith.constant 0 : i32
    return %c0_i32, %c0_i32_0 : i32, i32
  }
  func.func @transform_2(%arg0: i32, %arg1: i32) -> (i32, i32) {
    %c0_i32 = arith.constant 0 : i32
    %c0_i32_0 = arith.constant 0 : i32
    %c0_i32_1 = arith.constant 0 : i32
    return %c0_i32, %c0_i32_0 : i32, i32
  }
  func.func @transform_3(%arg0: i32, %arg1: i32) -> (i32, i32) {
    %c0_i32 = arith.constant 0 : i32
    %c0_i32_0 = arith.constant 0 : i32
    %c0_i32_1 = arith.constant 0 : i32
    return %c0_i32, %c0_i32_0 : i32, i32
  }
  func.func @transform_4(%arg0: i32, %arg1: i32) -> (i32, i32) {
    %c0_i32 = arith.constant 0 : i32
    %c0_i32_0 = arith.constant 0 : i32
    %c0_i32_1 = arith.constant 0 : i32
    return %c0_i32, %c0_i32_0 : i32, i32
  }
  func.func @transform_5(%arg0: i32, %arg1: i32) -> (i32, i32) {
    %c0_i32 = arith.constant 0 : i32
    %c0_i32_0 = arith.constant 0 : i32
    %c0_i32_1 = arith.constant 0 : i32
    return %c0_i32, %c0_i32_0 : i32, i32
  }
  func.func @transform_6(%arg0: i32, %arg1: i32) -> (i32, i32) {
    %c0_i32 = arith.constant 0 : i32
    %c0_i32_0 = arith.constant 0 : i32
    %c0_i32_1 = arith.constant 0 : i32
    return %c0_i32, %c0_i32_0 : i32, i32
  }
  func.func @transform_7(%arg0: i32, %arg1: i32) -> (i32, i32, i32) {
    %c0_i32 = arith.constant 0 : i32
    %c0_i32_0 = arith.constant 0 : i32
    return %arg0, %c0_i32, %arg1 : i32, i32, i32
  }
}

</mosaic_0001>

<bundles_post_ra>
// kernel: tpu_custom_call.1
= control target key start
LH: loop header
LB: loop body
LE: loop exit
PB: predicated region body
PF: predicated region fallthrough
CT: control target
= control target key end

     0   :  { %s3536_s24 = smov 0   ;;  %s3538_s25 = smov 0   ;;  %s4222_s0 = inlined_call_operand.vmem [shape: f32[2,8,7,8], index: 0, kind: input, shape index: {}]   ;;  %s4223_s1 = inlined_call_operand.vmem [shape: f32[16,7], index: 1, kind: input, shape index: {}]   ;;  %s4224_s2 = inlined_call_operand.vmem [shape: f32[16,1], index: 2, kind: input, shape index: {}]   ;;  %s4225_s3 = inlined_call_operand.vmem [shape: f32[32,16], index: 3, kind: input, shape index: {}]   ;;  %s4226_s4 = inlined_call_operand.vmem [shape: f32[32,1], index: 4, kind: input, shape index: {}]   ;;  %s4227_s5 = inlined_call_operand.vmem [shape: f32[32,32], index: 5, kind: input, shape index: {}]   ;;  %s4228_s6 = inlined_call_operand.vmem [shape: f32[32,1], index: 6, kind: input, shape index: {}]   ;;  %s4229_s7 = inlined_call_operand.vmem [shape: f32[2,32,8], index: 7, kind: output, shape index: {}]  }
   0x1   :  { %s3540_s26 = smov 0  }
   0x2 LB: > { %s29_s27 = sadd.s32 1, %s3489_s25  ;;  %p2805_p0 = scmp.ge.s32.totalorder %s3493_s26, 1  ;;  %s3493_s26 = sphi %s3540_s26, %s17_s26   ;;  %s3489_s25 = sphi %s3538_s25, %s4231_s25   ;;  %s3485_s24 = sphi %s3536_s24, %s4230_s24  }
   0x3   : > { %p31_p1 = scmp.ge.s32.totalorder %s29_s27, 2  ;;  %p256_p2 = scmp.lt.s32.totalorder %s3493_s26, 3 }
   0x5   : > { %s4233_s27 = smov (%p31_p1, %s29_s27), 0  ;;  %p257_p3 = pnand %p2805_p0, %p256_p2 }
   0x6   : > { %p294_p4 = scmp.lt.s32.totalorder (!%p257_p3), %s3485_s24, 1 }
   0x7   : > { %260 = sbr.rel (%p257_p3) target bundleno = 2153 (0x869), region = 48 }
   0xc   : > { %v3557_v0 = vld [vmem:[%s4223_s1] sm:$0xff]  ;;  %vm341_vm0 = vcmask 56320   ;;  %v3495_v1 = vmov 0   ;;  %v313_v2 = vld [vmem:[%s4224_s2 + $0x8] sm:$0xff]  ;;  %s4235_s24 = smov (!%p294_p4, %s3485_s24), 1  ;;  %vm348_vm1 = vcmask 1046528  }
   0xd   : > { %3079 = vmatprep.mubr.msk.f32.mxu0 %vm341_vm0, %v3557_v0  ;;  %3334 = vset.pattern.permute.xlu0 %v3495_v1  ;;  %v312_v3 = vld [vmem:[%s4224_s2] sm:$0xff]  ;;  %s2939_s11 = sshll.u32 %s4235_s24, 6  ;;  %v3579_v5 = vld [vmem:[%s4223_s1 + $0x8] sm:$0xff]  ;;  %v328_v8 = vld [vmem:[%s4228_s6 + $0x10] sm:$0xff]  ;;  %vm449_vm2 = vcmask 130048   ;;  %vm571_vm3 = vcmask 261120  }
   0xe   : > { %338 = vperm.xlu0 %3334, %v313_v2   ;;  %3335 = vset.pattern.permute.xlu1 %v3495_v1  ;;  %s3573_s14 = scalar_lea.vmem %s4222_s0, %s2939_s11  ;;  %v319_v6 = vld [vmem:[%s4226_s4 + $0x8] sm:$0xff]  ;;  %v326_v7 = vld [vmem:[%s4228_s6] sm:$0xff]  ;;  %v321_v10 = vld [vmem:[%s4226_s4 + $0x18] sm:$0xff]  ;;  %s2940_s30 = sshll.u32 %s4235_s24, 5  ;;  %vm2713_vm4 = vcmask 64512  }
   0xf   : > { %v330_v4 = vld [vmem:[%s3573_s14] sm:$0x7f]  ;;  %446 = vperm.xlu1 %3335, %v321_v10   ;;  %v320_v11 = vld [vmem:[%s4226_s4 + $0x10] sm:$0xff]  ;;  %v3619_v21 = vld [vmem:[%s4225_s3 + $0x8] sm:$0xff]  ;;  %s309_s10 = scalar_lea.vmem %s4229_s7, %s2940_s30 }
  0x10   : > { %3077 = vmatprep.subr.msk.mxu0 %vm348_vm1, %v330_v4  ;;  %v3597_v9 = vld [vmem:[%s4225_s3] sm:$0xff]  ;;  %v2825_v22 = vld [vmem:[%s3573_s14 + $0x8] sm:$0x7f]  ;;  %v3625_v23 = vld [vmem:[%s4225_s3 + $0x10] sm:$0xff] }
  0x11   : > { %3078 = vmatpush3.msk.msra.mxu0 %vm348_vm1, %v330_v4  ;;  %3086 = vmatprep.mubr.msk.f32.mxu1 %vm449_vm2, %v3597_v9  ;;  %v318_v12 = vld [vmem:[%s4226_s4] sm:$0xff]  ;;  %v3636_v24 = vld [vmem:[%s4225_s3 + $0x18] sm:$0xff]  ;;  %v327_v26 = vld [vmem:[%s4228_s6 + $0x8] sm:$0xff] }
  0x12   : > { %333 = vperm.xlu0 %3334, %v312_v3   ;;  %3080 = vmatmul.mubr.msk.f32.vlgmr.msra.gmra.mxu0 %vm341_vm0, %v3579_v5  ;;  %v3649_v25 = vld [vmem:[%s4227_s5] sm:$0xff]  ;;  %v329_v27 = vld [vmem:[%s4228_s6 + $0x18] sm:$0xff]  ;;  %v3690_v50 = vld [vmem:[%s4227_s5 + $0x8] sm:$0xff] }
  0x13   : > { %441 = vperm.xlu1 %3335, %v320_v11   ;;  %3100 = vmatprep.mubr.msk.f32.mxu0 %vm571_vm3, %v3649_v25  ;;  %v3696_v51 = vld [vmem:[%s4227_s5 + $0x10] sm:$0xff]  ;;  %v3711_v53 = vld [vmem:[%s4227_s5 + $0x18] sm:$0xff] }
  0x14   : > { %v2841_v52 = vld [vmem:[%s3573_s14 + $0x10] sm:$0x7f]  ;;  %v2857_v11 = vld [vmem:[%s3573_s14 + $0x18] sm:$0x7f] }
  0x16   : > { %436 = vperm.xlu0 %3334, %v319_v6  }
  0x17   : > { %431 = vperm.xlu1 %3335, %v318_v12  }
  0x1a   : > { %553 = vperm.xlu0 %3334, %v326_v7  }
  0x1b   : > { %558 = vperm.xlu1 %3335, %v327_v26  }
  0x1e   : > { %563 = vperm.xlu0 %3334, %v328_v8  }
  0x1f   : > { %568 = vperm.xlu1 %3335, %v329_v27  }
  0x89   : > { %v3610_v13 = vpop.permute.xlu0 %338 }
  0x8a   : > { %v3659_v28 = vpop.permute.xlu1 %446 }
  0x8d   : > { %v3613_v16 = vpop.permute.xlu0 %333 }
  0x8e   : > { %v3661_v29 = vpop.permute.xlu1 %441 }
  0x91   : > { %v3663_v33 = vpop.permute.xlu0 %436 }
  0x92   : > { %v3666_v35 = vpop.permute.xlu1 %431 }
  0xd2   : > { %v3081_v14 = vpop.f32.mrf.mxu0 }
  0xd3   : > { %v424_v15 = vadd.f32 %v3081_v14, %v3610_v13  ;;  %v3772_v14 = vpop.permute.xlu1 %558 }
  0xd4   : > { %v418_v17 = vpop.f32.mrf.mxu0 }
  0xd5   : > { %v428_v18 = vmax.f32 %v424_v15, 0.0  ;;  %v419_v19 = vadd.f32 %v418_v17, %v3613_v16 }
  0xd7   : > { %v427_v20 = vmax.f32 %v419_v19, 0.0  ;;  %3082 = vmatprep.subr.mxu1 %v428_v18 }
  0xd8   : > { %3083 = vmatpush3.msra.mxu1 %v428_v18  ;;  %v3775_v18 = vpop.permute.xlu0 %553 }
  0xd9   : > { %3084 = vmatprep.subr.mxu1 %v427_v20 }
  0xda   : > { %3085 = vmatpush3.msra.mxu1 %v427_v20 }
  0xdb   : > { %3087 = vmatmul.mubr.msk.f32.vlgmr.msra.gmra.mxu1 %vm449_vm2, %v3619_v21  ;;  %3106 = vmatprep.subr.msk.mxu1 %vm348_vm1, %v2825_v22 }
  0xdc   : > { %3107 = vmatpush3.msk.msra.mxu1 %vm348_vm1, %v2825_v22  ;;  %3089 = vmatprep.mubr.msk.f32.mxu1 %vm449_vm2, %v3625_v23  ;;  %v3778_v22 = vpop.permute.xlu1 %568 }
  0xdf   : > { %3090 = vmatmul.mubr.msk.f32.gmra.mxu1 %vm449_vm2, %v3636_v24 }
  0xe0   : > { %3108 = vmatprep.mubr.msk.f32.mxu1 %vm341_vm0, %v3557_v0 }
  0xe3   : > { %3109 = vmatmul.mubr.msk.f32.vlgmr.msra.gmra.mxu1 %vm341_vm0, %v3579_v5 }
  0xe4   : > { %3115 = vmatprep.mubr.msk.f32.mxu1 %vm449_vm2, %v3597_v9 }
 0x19b   : > { %v3088_v30 = vpop.f32.mrf.mxu1 }
 0x19c   : > { %v534_v37 = vadd.f32 %v3088_v30, %v3663_v33 }
 0x19d   : > { %v528_v31 = vpop.f32.mrf.mxu1 }
 0x19e   : > { %v529_v41 = vadd.f32 %v528_v31, %v3666_v35  ;;  %v3678_v45 = vmax.f32 %v534_v37, 0.0 }
 0x19f   : > { %v3091_v32 = vpop.f32.mrf.mxu1 }
 0x1a0   : > { %v544_v34 = vadd.f32 %v3091_v32, %v3659_v28  ;;  %v3683_v48 = vmax.f32 %v529_v41, 0.0 }
 0x1a1   : > { %v538_v36 = vpop.f32.mrf.mxu1 }
 0x1a2   : > { %v3669_v38 = vmax.f32 %v544_v34, 0.0  ;;  %v539_v39 = vadd.f32 %v538_v36, %v3661_v29 }
 0x1a3   : > { %v3110_v40 = vpop.f32.mrf.mxu1 }
 0x1a4   : > { %v3673_v42 = vmax.f32 %v539_v39, 0.0  ;;  %v774_v43 = vadd.f32 %v3110_v40, %v3610_v13  ;;  %3092 = vmatprep.subr.mxu0 %v3669_v38 }
 0x1a5   : > { %3093 = vmatpush3.msra.mxu0 %v3669_v38  ;;  %v768_v44 = vpop.f32.mrf.mxu1 }
 0x1a6   : > { %v778_v46 = vmax.f32 %v774_v43, 0.0  ;;  %v769_v47 = vadd.f32 %v768_v44, %v3613_v16  ;;  %3094 = vmatprep.subr.mxu0 %v3673_v42 }
 0x1a7   : > { %3095 = vmatpush3.msra.mxu0 %v3673_v42 }
 0x1a8   : > { %v777_v49 = vmax.f32 %v769_v47, 0.0  ;;  %3096 = vmatprep.subr.mxu0 %v3678_v45  ;;  %3111 = vmatprep.subr.mxu1 %v778_v46 }
 0x1a9   : > { %3097 = vmatpush3.msra.mxu0 %v3678_v45  ;;  %3112 = vmatpush3.msra.mxu1 %v778_v46 }
 0x1aa   : > { %3098 = vmatprep.subr.mxu0 %v3683_v48  ;;  %3113 = vmatprep.subr.mxu1 %v777_v49 }
 0x1ab   : > { %3099 = vmatpush3.msra.mxu0 %v3683_v48  ;;  %3114 = vmatpush3.msra.mxu1 %v777_v49 }
 0x1ac   : > { %3101 = vmatmul.mubr.msk.f32.vlgmr.msra.gmra.mxu0 %vm571_vm3, %v3690_v50  ;;  %3116 = vmatmul.mubr.msk.f32.vlgmr.msra.gmra.mxu1 %vm449_vm2, %v3619_v21 }
 0x1ad   : > { %3103 = vmatprep.mubr.msk.f32.mxu0 %vm571_vm3, %v3696_v51  ;;  %3118 = vmatprep.mubr.msk.f32.mxu1 %vm449_vm2, %v3625_v23 }
 0x1ae   : > { %3135 = vmatprep.subr.msk.mxu1 %vm348_vm1, %v2841_v52 }
 0x1af   : > { %3136 = vmatpush3.msk.msra.mxu1 %vm348_vm1, %v2841_v52 }
 0x1b0   : > { %3104 = vmatmul.mubr.msk.f32.gmra.mxu0 %vm571_vm3, %v3711_v53  ;;  %3119 = vmatmul.mubr.msk.f32.gmra.mxu1 %vm449_vm2, %v3636_v24 }
 0x1b1   : > { %3137 = vmatprep.mubr.msk.f32.mxu1 %vm341_vm0, %v3557_v0  ;;  %3129 = vmatprep.mubr.msk.f32.mxu0 %vm571_vm3, %v3649_v25 }
 0x1b4   : > { %3138 = vmatmul.mubr.msk.f32.vlgmr.msra.gmra.mxu1 %vm341_vm0, %v3579_v5 }
 0x1b5   : > { %3158 = vmatprep.mubr.msk.f32.mxu1 %vm571_vm3, %v3649_v25 }
 0x26c   : > { %v3117_v54 = vpop.f32.mrf.mxu1  ;;  %v3102_v12 = vpop.f32.mrf.mxu0 }
 0x26d   : > { %v851_v60 = vadd.f32 %v3117_v54, %v3663_v33  ;;  %v656_v17 = vadd.f32 %v3102_v12, %v3772_v14 }
 0x26e   : > { %v845_v55 = vpop.f32.mrf.mxu1  ;;  %v650_v15 = vpop.f32.mrf.mxu0 }
 0x26f   : > { %v846_v1 = vadd.f32 %v845_v55, %v3666_v35  ;;  %v3737_v3 = vmax.f32 %v851_v60, 0.0  ;;  %v651_v20 = vadd.f32 %v650_v15, %v3775_v18  ;;  %v2822_v26 = vmul.f32 -1.442695, %v656_v17 }
 0x270   : > { %v3120_v56 = vpop.f32.mrf.mxu1  ;;  %v3105_v19 = vpop.f32.mrf.mxu0 }
 0x271   : > { %v861_v57 = vadd.f32 %v3120_v56, %v3659_v28  ;;  %v3742_v6 = vmax.f32 %v846_v1, 0.0  ;;  %v666_v27 = vadd.f32 %v3105_v19, %v3778_v22  ;;  %v2821_v30 = vmul.f32 -1.442695, %v651_v20 }
 0x272   : > { %v855_v58 = vpop.f32.mrf.mxu1  ;;  %3336 = vpow2.f32 %v2822_v26  ;;  %v3781_v32 = vpop.f32.mrf.mxu0 }
 0x273   : > { %v856_v59 = vadd.f32 %v855_v58, %v3661_v29  ;;  %v3730_v61 = vmax.f32 %v861_v57, 0.0  ;;  %v2824_v31 = vmul.f32 -1.442695, %v666_v27  ;;  %3338 = vpow2.f32 %v2821_v30 }
 0x274   : > { %v3139_v62 = vpop.f32.mrf.mxu1 }
 0x275   : > { %v3732_v63 = vmax.f32 %v856_v59, 0.0  ;;  %3121 = vmatprep.subr.mxu0 %v3730_v61  ;;  %v1062_v4 = vadd.f32 %v3139_v62, %v3610_v13  ;;  %3340 = vpow2.f32 %v2824_v31 }
 0x276   : > { %3122 = vmatpush3.msra.mxu0 %v3730_v61  ;;  %v1056_v2 = vpop.f32.mrf.mxu1 }
 0x277   : > { %3123 = vmatprep.subr.mxu0 %v3732_v63  ;;  %v1057_v7 = vadd.f32 %v1056_v2, %v3613_v16  ;;  %v1066_v8 = vmax.f32 %v1062_v4, 0.0 }
 0x278   : > { %3124 = vmatpush3.msra.mxu0 %v3732_v63 }
 0x279   : > { %3125 = vmatprep.subr.mxu0 %v3737_v3  ;;  %v1065_v10 = vmax.f32 %v1057_v7, 0.0 }
 0x27a   : > { %3126 = vmatpush3.msra.mxu0 %v3737_v3 }
 0x27b   : > { %3127 = vmatprep.subr.mxu0 %v3742_v6 }
 0x27c   : > { %3128 = vmatpush3.msra.mxu0 %v3742_v6 }
 0x27d   : > { %3130 = vmatmul.mubr.msk.f32.vlgmr.msra.gmra.mxu0 %vm571_vm3, %v3690_v50  ;;  %3140 = vmatprep.subr.mxu0 %v1066_v8 }
 0x27e   : > { %3141 = vmatpush3.msra.mxu0 %v1066_v8  ;;  %3132 = vmatprep.mubr.msk.f32.mxu0 %vm571_vm3, %v3696_v51 }
 0x27f   : > { %3142 = vmatprep.subr.mxu0 %v1065_v10  ;;  %v3337_v54 = vpop.eup %3336 }
 0x280   : > { %3143 = vmatpush3.msra.mxu0 %v1065_v10  ;;  %v3339_v56 = vpop.eup %3338  ;;  %v682_v58 = vadd.f32 1.0, %v3337_v54 }
 0x281   : > { %3133 = vmatmul.mubr.msk.f32.gmra.mxu0 %vm571_vm3, %v3711_v53  ;;  %3164 = vmatprep.subr.msk.mxu0 %vm348_vm1, %v2857_v11  ;;  %v681_v4 = vadd.f32 1.0, %v3339_v56 }
 0x282   : > { %3144 = vmatprep.mubr.msk.f32.mxu0 %vm449_vm2, %v3597_v9  ;;  %v3341_v60 = vpop.eup %3340 }
 0x283   : > { %v684_v15 = vadd.f32 1.0, %v3341_v60 }
 0x285   : > { %3145 = vmatmul.mubr.msk.f32.vlgmr.msra.gmra.mxu0 %vm449_vm2, %v3619_v21 }
 0x286   : > { %3165 = vmatpush3.msk.msra.mxu0 %vm348_vm1, %v2857_v11  ;;  %3147 = vmatprep.mubr.msk.f32.mxu0 %vm449_vm2, %v3625_v23 }
 0x289   : > { %3148 = vmatmul.mubr.msk.f32.gmra.mxu0 %vm449_vm2, %v3636_v24 }
 0x28a   : > { %3166 = vmatprep.mubr.msk.f32.mxu0 %vm341_vm0, %v3557_v0 }
 0x28d   : > { %3167 = vmatmul.mubr.msk.f32.vlgmr.msra.gmra.mxu0 %vm341_vm0, %v3579_v5 }
 0x28e   : > { %3173 = vmatprep.mubr.msk.f32.mxu0 %vm449_vm2, %v3597_v9 }
 0x33d   : > { %v3131_v34 = vpop.f32.mrf.mxu0 }
 0x33e   : > { %v940_v36 = vadd.f32 %v3131_v34, %v3772_v14 }
 0x33f   : > { %v934_v37 = vpop.f32.mrf.mxu0 }
 0x340   : > { %v2838_v39 = vmul.f32 -1.442695, %v940_v36  ;;  %v935_v40 = vadd.f32 %v934_v37, %v3775_v18 }
 0x341   : > { %v3134_v41 = vpop.f32.mrf.mxu0 }
 0x342   : > { %3342 = vpow2.f32 %v2838_v39  ;;  %v2837_v43 = vmul.f32 -1.442695, %v935_v40  ;;  %v950_v44 = vadd.f32 %v3134_v41, %v3778_v22  ;;  %v2873_v40 = vld [vmem:[%s3573_s14 + $0x20] sm:$0x7f] }
 0x343   : > { %v3786_v46 = vpop.f32.mrf.mxu0 }
 0x344   : > { %3344 = vpow2.f32 %v2837_v43  ;;  %v2840_v47 = vmul.f32 -1.442695, %v950_v44 }
 0x345   : > { %v3146_v49 = vpop.f32.mrf.mxu0 }
 0x346   : > { %3346 = vpow2.f32 %v2840_v47  ;;  %v1139_v62 = vadd.f32 %v3146_v49, %v3663_v33 }
 0x347   : > { %v1133_v52 = vpop.f32.mrf.mxu0  ;;  %3348 = vrcp.f32 %v682_v58 }
 0x348   : > { %v1134_v8 = vadd.f32 %v1133_v52, %v3666_v35  ;;  %v3799_v20 = vmax.f32 %v1139_v62, 0.0  ;;  %3350 = vrcp.f32 %v681_v4 }
 0x349   : > { %v3149_v55 = vpop.f32.mrf.mxu0 }
 0x34a   : > { %v1149_v57 = vadd.f32 %v3149_v55, %v3659_v28  ;;  %v3804_v34 = vmax.f32 %v1134_v8, 0.0 }
 0x34b   : > { %v1143_v59 = vpop.f32.mrf.mxu0 }
 0x34c   : > { %v3790_v1 = vmax.f32 %v1149_v57, 0.0  ;;  %v1144_v2 = vadd.f32 %v1143_v59, %v3661_v29 }
 0x34d   : > { %v3168_v7 = vpop.f32.mrf.mxu0 }
 0x34e   : > { %v3794_v10 = vmax.f32 %v1144_v2, 0.0  ;;  %v1350_v11 = vadd.f32 %v3168_v7, %v3610_v13  ;;  %3150 = vmatprep.subr.mxu1 %v3790_v1 }
 0x34f   : > { %v3343_v12 = vpop.eup %3342  ;;  %3151 = vmatpush3.msra.mxu1 %v3790_v1  ;;  %v1344_v17 = vpop.f32.mrf.mxu0 }
 0x350   : > { %v966_v19 = vadd.f32 1.0, %v3343_v12  ;;  %v1354_v26 = vmax.f32 %v1350_v11, 0.0  ;;  %v1345_v27 = vadd.f32 %v1344_v17, %v3613_v16  ;;  %3152 = vmatprep.subr.mxu1 %v3794_v10 }
 0x351   : > { %v3345_v30 = vpop.eup %3344  ;;  %3153 = vmatpush3.msra.mxu1 %v3794_v10 }
 0x352   : > { %3352 = vrcp.f32 %v966_v19  ;;  %v965_v31 = vadd.f32 1.0, %v3345_v30  ;;  %v1353_v36 = vmax.f32 %v1345_v27, 0.0  ;;  %3154 = vmatprep.subr.mxu1 %v3799_v20  ;;  %3169 = vmatprep.subr.mxu0 %v1354_v26 }
 0x353   : > { %v3347_v37 = vpop.eup %3346  ;;  %3354 = vrcp.f32 %v684_v15  ;;  %3155 = vmatpush3.msra.mxu1 %v3799_v20  ;;  %3170 = vmatpush3.msra.mxu0 %v1354_v26 }
 0x354   : > { %3356 = vrcp.f32 %v965_v31  ;;  %v968_v39 = vadd.f32 1.0, %v3347_v37  ;;  %3156 = vmatprep.subr.mxu1 %v3804_v34  ;;  %3171 = vmatprep.subr.mxu0 %v1353_v36  ;;  %v3349_v41 = vpop.eup %3348 }
 0x355   : > { %3157 = vmatpush3.msra.mxu1 %v3804_v34  ;;  %3172 = vmatpush3.msra.mxu0 %v1353_v36  ;;  %v3351_v43 = vpop.eup %3350  ;;  %v3834_v49 = vmul.f32 %v3349_v41, %v3678_v45 }
 0x356   : > { %3358 = vrcp.f32 %v968_v39  ;;  %3159 = vmatmul.mubr.msk.f32.vlgmr.msra.gmra.mxu1 %vm571_vm3, %v3690_v50  ;;  %3174 = vmatmul.mubr.msk.f32.vlgmr.msra.gmra.mxu0 %vm449_vm2, %v3619_v21  ;;  %v3840_v55 = vmul.f32 %v3351_v43, %v3683_v48 }
 0x357   : > { %3161 = vmatprep.mubr.msk.f32.mxu1 %vm571_vm3, %v3696_v51  ;;  %3176 = vmatprep.mubr.msk.f32.mxu0 %vm449_vm2, %v3625_v23 }
 0x358   : > { %3193 = vmatprep.subr.msk.mxu0 %vm348_vm1, %v2873_v40 }
 0x359   : > { %3194 = vmatpush3.msk.msra.mxu0 %vm348_vm1, %v2873_v40 }
 0x35a   : > { %3162 = vmatmul.mubr.msk.f32.gmra.mxu1 %vm571_vm3, %v3711_v53  ;;  %3177 = vmatmul.mubr.msk.f32.gmra.mxu0 %vm449_vm2, %v3636_v24 }
 0x35b   : > { %3195 = vmatprep.mubr.msk.f32.mxu0 %vm341_vm0, %v3557_v0  ;;  %3187 = vmatprep.mubr.msk.f32.mxu1 %vm571_vm3, %v3649_v25 }
 0x35e   : > { %3196 = vmatmul.mubr.msk.f32.vlgmr.msra.gmra.mxu0 %vm341_vm0, %v3579_v5 }
 0x35f   : > { %v3353_v44 = vpop.eup %3352  ;;  %3216 = vmatprep.mubr.msk.f32.mxu0 %vm571_vm3, %v3649_v25 }
 0x360   : > { %v3355_v47 = vpop.eup %3354  ;;  %v3837_v52 = vmul.f32 %v3353_v44, %v3737_v3 }
 0x361   : > { %v3357_v54 = vpop.eup %3356  ;;  %v3848_v59 = vmul.f32 %v3355_v47, %v3669_v38 }
 0x362   : > { %v982_v56 = vmax.f32 %v3834_v49, %v3837_v52  ;;  %v3845_v57 = vmul.f32 %v3357_v54, %v3742_v6 }
 0x363   : > { %v3359_v58 = vpop.eup %3358 }
 0x364   : > { %v981_v45 = vmax.f32 %v3840_v55, %v3845_v57  ;;  %v3853_v3 = vmul.f32 %v3359_v58, %v3730_v61 }
 0x366   : > { %v984_v48 = vmax.f32 %v3848_v59, %v3853_v3 }
 0x416   : > { %v3160_v60 = vpop.f32.mrf.mxu1  ;;  %v3175_v62 = vpop.f32.mrf.mxu0 }
 0x417   : > { %v1228_v2 = vadd.f32 %v3160_v60, %v3772_v14  ;;  %v1427_v27 = vadd.f32 %v3175_v62, %v3663_v33  ;;  %v2889_v62 = vld [vmem:[%s3573_s14 + $0x28] sm:$0x7f] }
 0x418   : > { %v1222_v4 = vpop.f32.mrf.mxu1  ;;  %v1421_v6 = vpop.f32.mrf.mxu0 }
 0x419   : > { %v2854_v7 = vmul.f32 -1.442695, %v1228_v2  ;;  %v1223_v8 = vadd.f32 %v1222_v4, %v3775_v18  ;;  %v1422_v37 = vadd.f32 %v1421_v6, %v3666_v35  ;;  %v3870_v40 = vmax.f32 %v1427_v27, 0.0 }
 0x41a   : > { %v3163_v38 = vpop.f32.mrf.mxu1  ;;  %v3178_v11 = vpop.f32.mrf.mxu0 }
 0x41b   : > { %3360 = vpow2.f32 %v2854_v7  ;;  %v2853_v12 = vmul.f32 -1.442695, %v1223_v8  ;;  %v1238_v15 = vadd.f32 %v3163_v38, %v3778_v22  ;;  %v1437_v61 = vadd.f32 %v3178_v11, %v3659_v28 }
 0x41c   : > { %v1431_v17 = vpop.f32.mrf.mxu0  ;;  %v3875_v43 = vmax.f32 %v1422_v37, 0.0  ;;  %v1232_v52 = vpop.f32.mrf.mxu1 }
 0x41d   : > { %3362 = vpow2.f32 %v2853_v12  ;;  %v2856_v19 = vmul.f32 -1.442695, %v1238_v15  ;;  %v1432_v26 = vadd.f32 %v1431_v17, %v3661_v29  ;;  %v3863_v30 = vmax.f32 %v1437_v61, 0.0 }
 0x41e   : > { %v3197_v31 = vpop.f32.mrf.mxu0 }
 0x41f   : > { %3364 = vpow2.f32 %v2856_v19  ;;  %v3865_v36 = vmax.f32 %v1432_v26, 0.0  ;;  %3179 = vmatprep.subr.mxu1 %v3863_v30  ;;  %v1638_v41 = vadd.f32 %v3197_v31, %v3610_v13  ;;  %v3923_v26 = vpop.permute.xlu0 %563 }
 0x420   : > { %3180 = vmatpush3.msra.mxu1 %v3863_v30  ;;  %v1632_v39 = vpop.f32.mrf.mxu0  ;;  %v661_v49 = vadd.f32 %v3781_v32, %v3923_v26  ;;  %v1233_v55 = vadd.f32 %v1232_v52, %v3923_v26 }
 0x421   : > { %3181 = vmatprep.subr.mxu1 %v3865_v36  ;;  %v1633_v44 = vadd.f32 %v1632_v39, %v3613_v16  ;;  %v1642_v47 = vmax.f32 %v1638_v41, 0.0 }
 0x422   : > { %3182 = vmatpush3.msra.mxu1 %v3865_v36 }
 0x423   : > { %3183 = vmatprep.subr.mxu1 %v3870_v40  ;;  %v1641_v58 = vmax.f32 %v1633_v44, 0.0 }
 0x424   : > { %3184 = vmatpush3.msra.mxu1 %v3870_v40 }
 0x425   : > { %3185 = vmatprep.subr.mxu1 %v3875_v43 }
 0x426   : > { %3186 = vmatpush3.msra.mxu1 %v3875_v43 }
 0x427   : > { %3188 = vmatmul.mubr.msk.f32.vlgmr.msra.gmra.mxu1 %vm571_vm3, %v3690_v50  ;;  %3198 = vmatprep.subr.mxu1 %v1642_v47 }
 0x428   : > { %v3361_v54 = vpop.eup %3360  ;;  %3199 = vmatpush3.msra.mxu1 %v1642_v47  ;;  %3190 = vmatprep.mubr.msk.f32.mxu1 %vm571_vm3, %v3696_v51 }
 0x429   : > { %v1254_v60 = vadd.f32 1.0, %v3361_v54  ;;  %3200 = vmatprep.subr.mxu1 %v1641_v58 }
 0x42a   : > { %v3363_v2 = vpop.eup %3362  ;;  %3201 = vmatpush3.msra.mxu1 %v1641_v58 }
 0x42b   : > { %3366 = vrcp.f32 %v1254_v60  ;;  %v1253_v4 = vadd.f32 1.0, %v3363_v2  ;;  %3191 = vmatmul.mubr.msk.f32.gmra.mxu1 %vm571_vm3, %v3711_v53  ;;  %3222 = vmatprep.subr.msk.mxu1 %vm348_vm1, %v2889_v62 }
 0x42c   : > { %v3365_v6 = vpop.eup %3364  ;;  %3202 = vmatprep.mubr.msk.f32.mxu1 %vm449_vm2, %v3597_v9 }
 0x42d   : > { %3368 = vrcp.f32 %v1253_v4  ;;  %v1256_v7 = vadd.f32 1.0, %v3365_v6 }
 0x42f   : > { %3370 = vrcp.f32 %v1256_v7  ;;  %3203 = vmatmul.mubr.msk.f32.vlgmr.msra.gmra.mxu1 %vm449_vm2, %v3619_v21 }
 0x430   : > { %3223 = vmatpush3.msk.msra.mxu1 %vm348_vm1, %v2889_v62  ;;  %3205 = vmatprep.mubr.msk.f32.mxu1 %vm449_vm2, %v3625_v23 }
 0x433   : > { %3206 = vmatmul.mubr.msk.f32.gmra.mxu1 %vm449_vm2, %v3636_v24 }
 0x434   : > { %3224 = vmatprep.mubr.msk.f32.mxu1 %vm341_vm0, %v3557_v0 }
 0x437   : > { %3225 = vmatmul.mubr.msk.f32.vlgmr.msra.gmra.mxu1 %vm341_vm0, %v3579_v5 }
 0x438   : > { %v3367_v8 = vpop.eup %3366  ;;  %3231 = vmatprep.mubr.msk.f32.mxu1 %vm449_vm2, %v3597_v9 }
 0x439   : > { %v1266_v38 = vmul.f32 %v3367_v8, %v3799_v20 }
 0x43a   : > { %v3369_v11 = vpop.eup %3368 }
 0x43b   : > { %v3909_v12 = vmax.f32 %v982_v56, %v1266_v38  ;;  %v1265_v15 = vmul.f32 %v3369_v11, %v3804_v34  ;;  %v945_v34 = vadd.f32 %v3786_v46, %v3923_v26  ;;  %v2823_v56 = vmul.f32 -1.442695, %v661_v49 }
 0x43c   : > { %v3371_v61 = vpop.eup %3370 }
 0x43d   : > { %v3915_v17 = vmax.f32 %v981_v45, %v1265_v15  ;;  %v1268_v19 = vmul.f32 %v3371_v61, %v3790_v1  ;;  %v2839_v57 = vmul.f32 -1.442695, %v945_v34  ;;  %v2855_v45 = vmul.f32 -1.442695, %v1233_v55 }
 0x43e   : > { %3372 = vpow2.f32 %v2823_v56 }
 0x43f   : > { %v3921_v20 = vmax.f32 %v984_v48, %v1268_v19  ;;  %3374 = vpow2.f32 %v2839_v57 }
 0x440   : > { %3376 = vpow2.f32 %v2855_v45 }
 0x44b   : > { %v3373_v54 = vpop.eup %3372 }
 0x44c   : > { %v3375_v60 = vpop.eup %3374  ;;  %v683_v4 = vadd.f32 1.0, %v3373_v54 }
 0x44d   : > { %v3377_v2 = vpop.eup %3376  ;;  %v967_v7 = vadd.f32 1.0, %v3375_v60 }
 0x44e   : > { %v1255_v61 = vadd.f32 1.0, %v3377_v2 }
 0x4e7   : > { %v3189_v1 = vpop.f32.mrf.mxu1 }
 0x4e8   : > { %v1516_v59 = vadd.f32 %v3189_v1, %v3772_v14 }
 0x4e9   : > { %v1510_v3 = vpop.f32.mrf.mxu1 }
 0x4ea   : > { %v2870_v48 = vmul.f32 -1.442695, %v1516_v59  ;;  %v1511_v27 = vadd.f32 %v1510_v3, %v3775_v18 }
 0x4eb   : > { %v3192_v32 = vpop.f32.mrf.mxu1 }
 0x4ec   : > { %3378 = vpow2.f32 %v2870_v48  ;;  %v2869_v31 = vmul.f32 -1.442695, %v1511_v27  ;;  %v1526_v46 = vadd.f32 %v3192_v32, %v3778_v22 }
 0x4ed   : > { %v1520_v37 = vpop.f32.mrf.mxu1 }
 0x4ee   : > { %3380 = vpow2.f32 %v2869_v31  ;;  %v2872_v39 = vmul.f32 -1.442695, %v1526_v46  ;;  %v1521_v41 = vadd.f32 %v1520_v37, %v3923_v26 }
 0x4ef   : > { %v3204_v44 = vpop.f32.mrf.mxu1 }
 0x4f0   : > { %3382 = vpow2.f32 %v2872_v39  ;;  %v2871_v47 = vmul.f32 -1.442695, %v1521_v41  ;;  %v1715_v38 = vadd.f32 %v3204_v44, %v3663_v33  ;;  %v2905_v39 = vld [vmem:[%s3573_s14 + $0x30] sm:$0x7f] }
 0x4f1   : > { %v1709_v58 = vpop.f32.mrf.mxu1 }
 0x4f2   : > { %3384 = vpow2.f32 %v2871_v47  ;;  %v1710_v49 = vadd.f32 %v1709_v58, %v3666_v35  ;;  %v3945_v45 = vmax.f32 %v1715_v38, 0.0 }
 0x4f3   : > { %v3207_v62 = vpop.f32.mrf.mxu1  ;;  %3386 = vrcp.f32 %v683_v4 }
 0x4f4   : > { %v1725_v6 = vadd.f32 %v3207_v62, %v3659_v28  ;;  %3388 = vrcp.f32 %v967_v7  ;;  %v3950_v27 = vmax.f32 %v1710_v49, 0.0 }
 0x4f5   : > { %v1719_v8 = vpop.f32.mrf.mxu1  ;;  %3390 = vrcp.f32 %v1255_v61 }
 0x4f6   : > { %v3936_v11 = vmax.f32 %v1725_v6, 0.0  ;;  %v1720_v15 = vadd.f32 %v1719_v8, %v3661_v29 }
 0x4f7   : > { %v3226_v19 = vpop.f32.mrf.mxu1 }
 0x4f8   : > { %v3940_v52 = vmax.f32 %v1720_v15, 0.0  ;;  %v1926_v34 = vadd.f32 %v3226_v19, %v3610_v13  ;;  %3208 = vmatprep.subr.mxu0 %v3936_v11 }
 0x4f9   : > { %v3379_v55 = vpop.eup %3378  ;;  %3209 = vmatpush3.msra.mxu0 %v3936_v11  ;;  %v1920_v56 = vpop.f32.mrf.mxu1 }
 0x4fa   : > { %v1542_v57 = vadd.f32 1.0, %v3379_v55  ;;  %v1930_v1 = vmax.f32 %v1926_v34, 0.0  ;;  %v1921_v59 = vadd.f32 %v1920_v56, %v3613_v16  ;;  %3210 = vmatprep.subr.mxu0 %v3940_v52 }
 0x4fb   : > { %v3381_v3 = vpop.eup %3380  ;;  %3211 = vmatpush3.msra.mxu0 %v3940_v52 }
 0x4fc   : > { %3392 = vrcp.f32 %v1542_v57  ;;  %v1541_v48 = vadd.f32 1.0, %v3381_v3  ;;  %v1929_v32 = vmax.f32 %v1921_v59, 0.0  ;;  %3212 = vmatprep.subr.mxu0 %v3945_v45  ;;  %3227 = vmatprep.subr.mxu1 %v1930_v1 }
 0x4fd   : > { %v3383_v31 = vpop.eup %3382  ;;  %3213 = vmatpush3.msra.mxu0 %v3945_v45  ;;  %3228 = vmatpush3.msra.mxu1 %v1930_v1 }
 0x4fe   : > { %3394 = vrcp.f32 %v1541_v48  ;;  %v1544_v46 = vadd.f32 1.0, %v3383_v31  ;;  %3214 = vmatprep.subr.mxu0 %v3950_v27  ;;  %3229 = vmatprep.subr.mxu1 %v1929_v32 }
 0x4ff   : > { %v3385_v37 = vpop.eup %3384  ;;  %3215 = vmatpush3.msra.mxu0 %v3950_v27  ;;  %3230 = vmatpush3.msra.mxu1 %v1929_v32 }
 0x500   : > { %3396 = vrcp.f32 %v1544_v46  ;;  %v1543_v41 = vadd.f32 1.0, %v3385_v37  ;;  %3217 = vmatmul.mubr.msk.f32.vlgmr.msra.gmra.mxu0 %vm571_vm3, %v3690_v50  ;;  %3232 = vmatmul.mubr.msk.f32.vlgmr.msra.gmra.mxu1 %vm449_vm2, %v3619_v21  ;;  %v3387_v44 = vpop.eup %3386 }
 0x501   : > { %3219 = vmatprep.mubr.msk.f32.mxu0 %vm571_vm3, %v3696_v51  ;;  %3234 = vmatprep.mubr.msk.f32.mxu1 %vm449_vm2, %v3625_v23  ;;  %v3389_v47 = vpop.eup %3388  ;;  %v695_v4 = vmul.f32 %v3387_v44, %v3673_v42 }
 0x502   : > { %3398 = vrcp.f32 %v1543_v41  ;;  %3251 = vmatprep.subr.msk.mxu1 %vm348_vm1, %v2905_v39  ;;  %v3391_v54 = vpop.eup %3390  ;;  %v979_v60 = vmul.f32 %v3389_v47, %v3732_v63 }
 0x503   : > { %3252 = vmatpush3.msk.msra.mxu1 %vm348_vm1, %v2905_v39  ;;  %v1267_v6 = vmul.f32 %v3391_v54, %v3794_v10 }
 0x504   : > { %3220 = vmatmul.mubr.msk.f32.gmra.mxu0 %vm571_vm3, %v3711_v53  ;;  %3235 = vmatmul.mubr.msk.f32.gmra.mxu1 %vm449_vm2, %v3636_v24  ;;  %v983_v15 = vmax.f32 %v695_v4, %v979_v60 }
 0x505   : > { %3253 = vmatprep.mubr.msk.f32.mxu1 %vm341_vm0, %v3557_v0  ;;  %3245 = vmatprep.mubr.msk.f32.mxu0 %vm571_vm3, %v3649_v25 }
 0x506   : > { %v3995_v61 = vmax.f32 %v983_v15, %v1267_v6 }
 0x508   : > { %3254 = vmatmul.mubr.msk.f32.vlgmr.msra.gmra.mxu1 %vm341_vm0, %v3579_v5 }
 0x509   : > { %v3393_v58 = vpop.eup %3392  ;;  %3274 = vmatprep.mubr.msk.f32.mxu1 %vm571_vm3, %v3649_v25 }
 0x50a   : > { %v3981_v62 = vmul.f32 %v3393_v58, %v3870_v40 }
 0x50b   : > { %v3395_v2 = vpop.eup %3394 }
 0x50c   : > { %v1558_v7 = vmax.f32 %v3909_v12, %v3981_v62  ;;  %v3988_v8 = vmul.f32 %v3395_v2, %v3875_v43 }
 0x50d   : > { %v3397_v38 = vpop.eup %3396 }
 0x50e   : > { %v1557_v25 = vmax.f32 %v3915_v17, %v3988_v8  ;;  %v3993_v63 = vmul.f32 %v3397_v38, %v3863_v30 }
 0x50f   : > { %v3399_v40 = vpop.eup %3398 }
 0x510   : > { %v1560_v42 = vmax.f32 %v3921_v20, %v3993_v63  ;;  %v4000_v10 = vmul.f32 %v3399_v40, %v3865_v36 }
 0x512   : > { %v1559_v43 = vmax.f32 %v3995_v61, %v4000_v10 }
 0x5c0   : > { %v3218_v19 = vpop.f32.mrf.mxu0  ;;  %v3233_v49 = vpop.f32.mrf.mxu1 }
 0x5c1   : > { %v1804_v34 = vadd.f32 %v3218_v19, %v3772_v14  ;;  %v2003_v37 = vadd.f32 %v3233_v49, %v3663_v33  ;;  %v2921_v19 = vld [vmem:[%s3573_s14 + $0x38] sm:$0x7f] }
 0x5c2   : > { %v1798_v55 = vpop.f32.mrf.mxu0  ;;  %v1997_v56 = vpop.f32.mrf.mxu1 }
 0x5c3   : > { %v2886_v30 = vmul.f32 -1.442695, %v1804_v34  ;;  %v1799_v57 = vadd.f32 %v1798_v55, %v3775_v18  ;;  %v1998_v47 = vadd.f32 %v1997_v56, %v3666_v35  ;;  %v4017_v58 = vmax.f32 %v2003_v37, 0.0 }
 0x5c4   : > { %v3221_v1 = vpop.f32.mrf.mxu0  ;;  %v3236_v59 = vpop.f32.mrf.mxu1 }
 0x5c5   : > { %3400 = vpow2.f32 %v2886_v30  ;;  %v2885_v3 = vmul.f32 -1.442695, %v1799_v57  ;;  %v1814_v48 = vadd.f32 %v3221_v1, %v3778_v22  ;;  %v2013_v36 = vadd.f32 %v3236_v59, %v3659_v28 }
 0x5c6   : > { %v2007_v32 = vpop.f32.mrf.mxu1  ;;  %v4022_v2 = vmax.f32 %v1998_v47, 0.0 }
 0x5c7   : > { %3402 = vpow2.f32 %v2885_v3  ;;  %v2888_v31 = vmul.f32 -1.442695, %v1814_v48  ;;  %v2008_v46 = vadd.f32 %v2007_v32, %v3661_v29  ;;  %v4010_v39 = vmax.f32 %v2013_v36, 0.0 }
 0x5c8   : > { %v3255_v41 = vpop.f32.mrf.mxu1 }
 0x5c9   : > { %3404 = vpow2.f32 %v2888_v31  ;;  %v4012_v44 = vmax.f32 %v2008_v46, 0.0  ;;  %3237 = vmatprep.subr.mxu0 %v4010_v39  ;;  %v2214_v60 = vadd.f32 %v3255_v41, %v3610_v13 }
 0x5ca   : > { %3238 = vmatpush3.msra.mxu0 %v4010_v39  ;;  %v2208_v54 = vpop.f32.mrf.mxu1 }
 0x5cb   : > { %3239 = vmatprep.subr.mxu0 %v4012_v44  ;;  %v2209_v4 = vadd.f32 %v2208_v54, %v3613_v16  ;;  %v2218_v6 = vmax.f32 %v2214_v60, 0.0 }
 0x5cc   : > { %3240 = vmatpush3.msra.mxu0 %v4012_v44 }
 0x5cd   : > { %3241 = vmatprep.subr.mxu0 %v4017_v58  ;;  %v2217_v15 = vmax.f32 %v2209_v4, 0.0 }
 0x5ce   : > { %3242 = vmatpush3.msra.mxu0 %v4017_v58 }
 0x5cf   : > { %3243 = vmatprep.subr.mxu0 %v4022_v2 }
 0x5d0   : > { %3244 = vmatpush3.msra.mxu0 %v4022_v2 }
 0x5d1   : > { %3246 = vmatmul.mubr.msk.f32.vlgmr.msra.gmra.mxu0 %vm571_vm3, %v3690_v50  ;;  %3256 = vmatprep.subr.mxu0 %v2218_v6 }
 0x5d2   : > { %v3401_v38 = vpop.eup %3400  ;;  %3257 = vmatpush3.msra.mxu0 %v2218_v6  ;;  %3248 = vmatprep.mubr.msk.f32.mxu0 %vm571_vm3, %v3696_v51 }
 0x5d3   : > { %v1830_v40 = vadd.f32 1.0, %v3401_v38  ;;  %3258 = vmatprep.subr.mxu0 %v2217_v15 }
 0x5d4   : > { %v3403_v49 = vpop.eup %3402  ;;  %3259 = vmatpush3.msra.mxu0 %v2217_v15 }
 0x5d5   : > { %3406 = vrcp.f32 %v1830_v40  ;;  %v1829_v34 = vadd.f32 1.0, %v3403_v49  ;;  %3249 = vmatmul.mubr.msk.f32.gmra.mxu0 %vm571_vm3, %v3711_v53  ;;  %3280 = vmatprep.subr.msk.mxu0 %vm348_vm1, %v2921_v19 }
 0x5d6   : > { %v3405_v55 = vpop.eup %3404  ;;  %3260 = vmatprep.mubr.msk.f32.mxu0 %vm449_vm2, %v3597_v9 }
 0x5d7   : > { %3408 = vrcp.f32 %v1829_v34  ;;  %v1832_v56 = vadd.f32 1.0, %v3405_v55 }
 0x5d9   : > { %3410 = vrcp.f32 %v1832_v56  ;;  %3261 = vmatmul.mubr.msk.f32.vlgmr.msra.gmra.mxu0 %vm449_vm2, %v3619_v21 }
 0x5da   : > { %3281 = vmatpush3.msk.msra.mxu0 %vm348_vm1, %v2921_v19  ;;  %3263 = vmatprep.mubr.msk.f32.mxu0 %vm449_vm2, %v3625_v23 }
 0x5dd   : > { %3264 = vmatmul.mubr.msk.f32.gmra.mxu0 %vm449_vm2, %v3636_v24 }
 0x5de   : > { %3282 = vmatprep.mubr.msk.f32.mxu0 %vm341_vm0, %v3557_v0 }
 0x5e1   : > { %3283 = vmatmul.mubr.msk.f32.vlgmr.msra.gmra.mxu0 %vm341_vm0, %v3579_v5 }
 0x5e2   : > { %v3407_v30 = vpop.eup %3406  ;;  %3289 = vmatprep.mubr.msk.f32.mxu0 %vm449_vm2, %v3597_v9 }
 0x5e3   : > { %v1842_v57 = vmul.f32 %v3407_v30, %v3945_v45  ;;  %v1808_v45 = vpop.f32.mrf.mxu0 }
 0x5e4   : > { %v3409_v21 = vpop.eup %3408  ;;  %v1809_v12 = vadd.f32 %v1808_v45, %v3923_v26 }
 0x5e5   : > { %v4056_v23 = vmax.f32 %v1558_v7, %v1842_v57  ;;  %v1841_v24 = vmul.f32 %v3409_v21, %v3950_v27 }
 0x5e6   : > { %v3411_v1 = vpop.eup %3410  ;;  %v2887_v62 = vmul.f32 -1.442695, %v1809_v12  ;;  %v3464_v12 = vld [vmem:[%s4225_s3 + $0x8] sm:$0xff] }
 0x5e7   : > { %v4062_v0 = vmax.f32 %v1557_v25, %v1841_v24  ;;  %v1844_v5 = vmul.f32 %v3411_v1, %v3936_v11 }
 0x5e8   : > { %3412 = vpow2.f32 %v2887_v62  ;;  %v3465_v62 = vld [vmem:[%s4225_s3 + $0x10] sm:$0xff] }
 0x5e9   : > { %v4068_v9 = vmax.f32 %v1560_v42, %v1844_v5 }
 0x5f5   : > { %v3413_v46 = vpop.eup %3412 }
 0x5f6   : > { %v1831_v4 = vadd.f32 1.0, %v3413_v46 }
 0x691   : > { %v3247_v7 = vpop.f32.mrf.mxu0 }
 0x692   : > { %v2092_v27 = vadd.f32 %v3247_v7, %v3772_v14 }
 0x693   : > { %v2086_v59 = vpop.f32.mrf.mxu0 }
 0x694   : > { %v2902_v3 = vmul.f32 -1.442695, %v2092_v27  ;;  %v2087_v17 = vadd.f32 %v2086_v59, %v3775_v18 }
 0x695   : > { %v3250_v8 = vpop.f32.mrf.mxu0 }
 0x696   : > { %3414 = vpow2.f32 %v2902_v3  ;;  %v2901_v11 = vmul.f32 -1.442695, %v2087_v17  ;;  %v2102_v25 = vadd.f32 %v3250_v8, %v3778_v22 }
 0x697   : > { %v2096_v20 = vpop.f32.mrf.mxu0 }
 0x698   : > { %3416 = vpow2.f32 %v2901_v11  ;;  %v2904_v63 = vmul.f32 -1.442695, %v2102_v25  ;;  %v2097_v42 = vadd.f32 %v2096_v20, %v3923_v26 }
 0x699   : > { %v3262_v48 = vpop.f32.mrf.mxu0 }
 0x69a   : > { %3418 = vpow2.f32 %v2904_v63  ;;  %v2903_v36 = vmul.f32 -1.442695, %v2097_v42  ;;  %v2291_v47 = vadd.f32 %v3262_v48, %v3663_v33 }
 0x69b   : > { %v2285_v32 = vpop.f32.mrf.mxu0 }
 0x69c   : > { %3420 = vpow2.f32 %v2903_v36  ;;  %v2286_v38 = vadd.f32 %v2285_v32, %v3666_v35  ;;  %v4086_v55 = vmax.f32 %v2291_v47, 0.0 }
 0x69d   : > { %v3265_v31 = vpop.f32.mrf.mxu0  ;;  %3422 = vrcp.f32 %v1831_v4 }
 0x69e   : > { %v2301_v37 = vadd.f32 %v3265_v31, %v3659_v28  ;;  %v4091_v21 = vmax.f32 %v2286_v38, 0.0 }
 0x69f   : > { %v2295_v41 = vpop.f32.mrf.mxu0 }
 0x6a0   : > { %v4077_v54 = vmax.f32 %v2301_v37, 0.0  ;;  %v2296_v60 = vadd.f32 %v2295_v41, %v3661_v29 }
 0x6a1   : > { %v3284_v6 = vpop.f32.mrf.mxu0 }
 0x6a2   : > { %v4081_v15 = vmax.f32 %v2296_v60, 0.0  ;;  %v2502_v40 = vadd.f32 %v3284_v6, %v3610_v13  ;;  %3266 = vmatprep.subr.mxu1 %v4077_v54 }
 0x6a3   : > { %v3415_v19 = vpop.eup %3414  ;;  %3267 = vmatpush3.msra.mxu1 %v4077_v54  ;;  %v2496_v49 = vpop.f32.mrf.mxu0 }
 0x6a4   : > { %v2118_v34 = vadd.f32 1.0, %v3415_v19  ;;  %v2506_v56 = vmax.f32 %v2502_v40, 0.0  ;;  %v2497_v30 = vadd.f32 %v2496_v49, %v3613_v16  ;;  %3268 = vmatprep.subr.mxu1 %v4081_v15 }
 0x6a5   : > { %v3417_v57 = vpop.eup %3416  ;;  %3269 = vmatpush3.msra.mxu1 %v4081_v15 }
 0x6a6   : > { %3424 = vrcp.f32 %v2118_v34  ;;  %v2117_v13 = vadd.f32 1.0, %v3417_v57  ;;  %v2505_v24 = vmax.f32 %v2497_v30, 0.0  ;;  %3270 = vmatprep.subr.mxu1 %v4086_v55  ;;  %3285 = vmatprep.subr.mxu0 %v2506_v56 }
 0x6a7   : > { %v3419_v1 = vpop.eup %3418  ;;  %3271 = vmatpush3.msra.mxu1 %v4086_v55  ;;  %3286 = vmatpush3.msra.mxu0 %v2506_v56 }
 0x6a8   : > { %3426 = vrcp.f32 %v2117_v13  ;;  %v2120_v16 = vadd.f32 1.0, %v3419_v1  ;;  %3272 = vmatprep.subr.mxu1 %v4091_v21  ;;  %3287 = vmatprep.subr.mxu0 %v2505_v24 }
 0x6a9   : > { %v3421_v5 = vpop.eup %3420  ;;  %3273 = vmatpush3.msra.mxu1 %v4091_v21  ;;  %3288 = vmatpush3.msra.mxu0 %v2505_v24 }
 0x6aa   : > { %3428 = vrcp.f32 %v2120_v16  ;;  %v2119_v45 = vadd.f32 1.0, %v3421_v5  ;;  %3275 = vmatmul.mubr.msk.f32.vlgmr.msra.gmra.mxu1 %vm571_vm3, %v3690_v50  ;;  %3290 = vmatmul.mubr.msk.f32.vlgmr.msra.gmra.mxu0 %vm449_vm2, %v3464_v12  ;;  %v3466_v50 = vld [vmem:[%s4225_s3 + $0x18] sm:$0xff]  ;;  %v3423_v7 = vpop.eup %3422 }
 0x6ab   : > { %3277 = vmatprep.mubr.msk.f32.mxu1 %vm571_vm3, %v3696_v51  ;;  %3292 = vmatprep.mubr.msk.f32.mxu0 %vm449_vm2, %v3465_v62  ;;  %v3467_v51 = vld [vmem:[%s4227_s5] sm:$0xff] }
 0x6ac   : > { %3430 = vrcp.f32 %v2119_v45 }
 0x6ae   : > { %3278 = vmatmul.mubr.msk.f32.gmra.mxu1 %vm571_vm3, %v3711_v53  ;;  %3293 = vmatmul.mubr.msk.f32.gmra.mxu0 %vm449_vm2, %v3466_v50  ;;  %v1843_v53 = vmul.f32 %v3423_v7, %v3940_v52 }
 0x6af   : > { %3303 = vmatprep.mubr.msk.f32.mxu1 %vm571_vm3, %v3467_v51 }
 0x6b3   : > { %v3425_v27 = vpop.eup %3424 }
 0x6b4   : > { %v4120_v59 = vmul.f32 %v3425_v27, %v4017_v58  ;;  %v4136_v58 = vmax.f32 %v1559_v43, %v1843_v53 }
 0x6b5   : > { %v3427_v3 = vpop.eup %3426 }
 0x6b6   : > { %v2134_v17 = vmax.f32 %v4056_v23, %v4120_v59  ;;  %v4126_v8 = vmul.f32 %v3427_v3, %v4022_v2 }
 0x6b7   : > { %v3429_v11 = vpop.eup %3428 }
 0x6b8   : > { %v2133_v25 = vmax.f32 %v4062_v0, %v4126_v8  ;;  %v4131_v20 = vmul.f32 %v3429_v11, %v4010_v39 }
 0x6b9   : > { %v3431_v63 = vpop.eup %3430 }
 0x6ba   : > { %v2136_v52 = vmax.f32 %v4068_v9, %v4131_v20  ;;  %v4141_v42 = vmul.f32 %v3431_v63, %v4012_v44 }
 0x6bc   : > { %v2135_v2 = vmax.f32 %v4136_v58, %v4141_v42 }
 0x76a   : > { %v3291_v48 = vpop.f32.mrf.mxu0  ;;  %v3276_v41 = vpop.f32.mrf.mxu1 }
 0x76b   : > { %v2579_v61 = vadd.f32 %v3291_v48, %v3663_v33  ;;  %v3469_v33 = vld [vmem:[%s4227_s5 + $0x10] sm:$0xff]  ;;  %v2380_v4 = vadd.f32 %v3276_v41, %v3772_v14 }
 0x76c   : > { %v2573_v36 = vpop.f32.mrf.mxu0  ;;  %v2374_v47 = vpop.f32.mrf.mxu1 }
 0x76d   : > { %v2574_v44 = vadd.f32 %v2573_v36, %v3666_v35  ;;  %v4155_v37 = vmax.f32 %v2579_v61, 0.0  ;;  %v3470_v35 = vld [vmem:[%s4227_s5 + $0x18] sm:$0xff]  ;;  %v2375_v6 = vadd.f32 %v2374_v47, %v3775_v18  ;;  %v2918_v40 = vmul.f32 -1.442695, %v2380_v4 }
 0x76e   : > { %v3294_v32 = vpop.f32.mrf.mxu0  ;;  %v3279_v60 = vpop.f32.mrf.mxu1 }
 0x76f   : > { %v2589_v39 = vadd.f32 %v3294_v32, %v3659_v28  ;;  %v4159_v28 = vmax.f32 %v2574_v44, 0.0  ;;  %v2390_v19 = vadd.f32 %v3279_v60, %v3778_v22  ;;  %v2917_v34 = vmul.f32 -1.442695, %v2375_v6 }
 0x770   : > { %v2583_v31 = vpop.f32.mrf.mxu0  ;;  %v2384_v38 = vpop.f32.mrf.mxu1  ;;  %3432 = vpow2.f32 %v2918_v40 }
 0x771   : > { %v2584_v46 = vadd.f32 %v2583_v31, %v3661_v29  ;;  %v4148_v10 = vmax.f32 %v2589_v39, 0.0  ;;  %v3468_v29 = vld [vmem:[%s4227_s5 + $0x8] sm:$0xff]  ;;  %v2385_v49 = vadd.f32 %v2384_v38, %v3923_v26  ;;  %v2920_v56 = vmul.f32 -1.442695, %v2390_v19 }
 0x772   : > { %3434 = vpow2.f32 %v2917_v34 }
 0x773   : > { %v4150_v43 = vmax.f32 %v2584_v46, 0.0  ;;  %3295 = vmatprep.subr.mxu1 %v4148_v10  ;;  %v2919_v30 = vmul.f32 -1.442695, %v2385_v49  ;;  %3436 = vpow2.f32 %v2920_v56 }
 0x774   : > { %3296 = vmatpush3.msra.mxu1 %v4148_v10 }
 0x775   : > { %3297 = vmatprep.subr.mxu1 %v4150_v43  ;;  %3438 = vpow2.f32 %v2919_v30 }
 0x776   : > { %3298 = vmatpush3.msra.mxu1 %v4150_v43 }
 0x777   : > { %3299 = vmatprep.subr.mxu1 %v4155_v37 }
 0x778   : > { %3300 = vmatpush3.msra.mxu1 %v4155_v37 }
 0x779   : > { %3301 = vmatprep.subr.mxu1 %v4159_v28 }
 0x77a   : > { %3302 = vmatpush3.msra.mxu1 %v4159_v28 }
 0x77b   : > { %3304 = vmatmul.mubr.msk.f32.vlgmr.msra.gmra.mxu1 %vm571_vm3, %v3468_v29 }
 0x77c   : > { %3306 = vmatprep.mubr.msk.f32.mxu1 %vm571_vm3, %v3469_v33 }
 0x77d   : > { %v3433_v7 = vpop.eup %3432 }
 0x77e   : > { %v2406_v53 = vadd.f32 1.0, %v3433_v7 }
 0x77f   : > { %3307 = vmatmul.mubr.msk.f32.gmra.mxu1 %vm571_vm3, %v3470_v35  ;;  %v3435_v3 = vpop.eup %3434 }
 0x780   : > { %v2405_v63 = vadd.f32 1.0, %v3435_v3 }
 0x83b   : > { %v3305_v57 = vpop.f32.mrf.mxu1 }
 0x83c   : > { %v2668_v13 = vadd.f32 %v3305_v57, %v3772_v14  ;;  %v3437_v14 = vpop.eup %3436 }
 0x83d   : > { %v2662_v24 = vpop.f32.mrf.mxu1  ;;  %v3439_v11 = vpop.eup %3438 }
 0x83e   : > { %v2934_v1 = vmul.f32 -1.442695, %v2668_v13  ;;  %v2663_v16 = vadd.f32 %v2662_v24, %v3775_v18  ;;  %v2408_v18 = vadd.f32 1.0, %v3437_v14  ;;  %v2407_v48 = vadd.f32 1.0, %v3439_v11 }
 0x83f   : > { %v3308_v5 = vpop.f32.mrf.mxu1 }
 0x840   : > { %3440 = vpow2.f32 %v2934_v1  ;;  %v2933_v45 = vmul.f32 -1.442695, %v2663_v16  ;;  %v2678_v12 = vadd.f32 %v3308_v5, %v3778_v22 }
 0x841   : > { %v2672_v62 = vpop.f32.mrf.mxu1 }
 0x842   : > { %3442 = vpow2.f32 %v2933_v45  ;;  %v2936_v50 = vmul.f32 -1.442695, %v2678_v12  ;;  %v2673_v51 = vadd.f32 %v2672_v62, %v3923_v26 }
 0x844   : > { %3444 = vpow2.f32 %v2936_v50  ;;  %v2935_v27 = vmul.f32 -1.442695, %v2673_v51 }
 0x846   : > { %3446 = vpow2.f32 %v2935_v27 }
 0x847   : > { %3448 = vrcp.f32 %v2406_v53 }
 0x848   : > { %3450 = vrcp.f32 %v2405_v63 }
 0x849   : > { %3452 = vrcp.f32 %v2408_v18 }
 0x84a   : > { %3454 = vrcp.f32 %v2407_v48 }
 0x84d   : > { %v3441_v36 = vpop.eup %3440 }
 0x84e   : > { %v2694_v22 = vadd.f32 1.0, %v3441_v36 }
 0x84f   : > { %v3443_v32 = vpop.eup %3442 }
 0x850   : > { %3456 = vrcp.f32 %v2694_v22  ;;  %v2693_v26 = vadd.f32 1.0, %v3443_v32 }
 0x851   : > { %v3445_v39 = vpop.eup %3444 }
 0x852   : > { %3458 = vrcp.f32 %v2693_v26  ;;  %v2696_v31 = vadd.f32 1.0, %v3445_v39 }
 0x853   : > { %v3447_v46 = vpop.eup %3446 }
 0x854   : > { %3460 = vrcp.f32 %v2696_v31  ;;  %v2695_v61 = vadd.f32 1.0, %v3447_v46  ;;  %v3449_v44 = vpop.eup %3448 }
 0x855   : > { %v3451_v29 = vpop.eup %3450  ;;  %v2418_v33 = vmul.f32 %v3449_v44, %v4086_v55 }
 0x856   : > { %3462 = vrcp.f32 %v2695_v61  ;;  %v3453_v35 = vpop.eup %3452  ;;  %v2417_v47 = vmul.f32 %v3451_v29, %v4091_v21 }
 0x857   : > { %v3455_v41 = vpop.eup %3454  ;;  %v2422_v4 = vmax.f32 %v2134_v17, %v2418_v33  ;;  %v2420_v6 = vmul.f32 %v3453_v35, %v4077_v54 }
 0x858   : > { %v2421_v55 = vmax.f32 %v2133_v25, %v2417_v47  ;;  %v2419_v21 = vmul.f32 %v3455_v41, %v4081_v15 }
 0x859   : > { %v2424_v54 = vmax.f32 %v2136_v52, %v2420_v6 }
 0x85a   : > { %v2423_v0 = vmax.f32 %v2135_v2, %v2419_v21 }
 0x85d   : > { %v3457_v60 = vpop.eup %3456 }
 0x85e   : > { %v2706_v38 = vmul.f32 %v3457_v60, %v4155_v37 }
 0x85f   : > { %v3459_v40 = vpop.eup %3458 }
 0x860   : > { %v2710_v19 = vmax.f32 %v2422_v4, %v2706_v38  ;;  %v2705_v23 = vmul.f32 %v3459_v40, %v4159_v28 }
 0x861   : > { %v3461_v59 = vpop.eup %3460 }
 0x862   : > { %2715 = vst.msk [vmem:[%s309_s10 + $0x8] sm:$0xff] %vm2713_vm4, %v2710_v19  ;;  %v2709_v17 = vmax.f32 %v2421_v55, %v2705_v23  ;;  %v2708_v37 = vmul.f32 %v3461_v59, %v4148_v10 }
 0x863   : > { %v3463_v49 = vpop.eup %3462 }
 0x864   : > { %2714 = vst.msk [vmem:[%s309_s10] sm:$0xff] %vm2713_vm4, %v2709_v17  ;;  %v2712_v15 = vmax.f32 %v2424_v54, %v2708_v37  ;;  %v2707_v8 = vmul.f32 %v3463_v49, %v4150_v43 }
 0x866   : > { %2717 = vst.msk [vmem:[%s309_s10 + $0x18] sm:$0xff] %vm2713_vm4, %v2712_v15  ;;  %v2711_v25 = vmax.f32 %v2423_v0, %v2707_v8 }
 0x868   : > { %2716 = vst.msk [vmem:[%s309_s10 + $0x10] sm:$0xff] %vm2713_vm4, %v2711_v25 }
 0x869 PF: > { %s17_s26 = sadd.s32 1, %s3493_s26   ;;  %s4230_s24 = smov %s3489_s25 }
 0x86a   : > { %p14_p5 = scmp.ge.s32.totalorder %s17_s26, 4   ;;  %s4231_s25 = smov %s4233_s27 }
 0x86c   :  { %16 = sbr.rel (!%p14_p5) target bundleno = 2 (0x2), region = 85 }

</bundles_post_ra>
